<compile_context>
chip_gen: v6e
topology: v6e:2x2x1
jax: 0.10.0
libtpu: 0.0.40
codegen_flags: <defaults>
</compile_context>

<pallas_src>
import functools

import jax
import jax.numpy as jnp
from jax import lax
from jax.experimental import pallas as pl
from jax.experimental.pallas import tpu as pltpu

# Fixed hyper-parameters from WeightNet.__init__ (the torch module hard-codes them).
M = 2
G = 2


def _round_up(n, m):
    return (n + m - 1) // m * m


# ---------------------------------------------------------------------------
# Fused kernel: one grid step = (batch sample b, output-channel tile j)
# ---------------------------------------------------------------------------
def weightnet_kernel(ve_ref, vo_ref, mask_ref, w2_ref, x_ref, o_ref,
                     xpad_ref, slab_ref, *, K, S, H, W, Ho, Wo, inp, pad):
    # ve/vo   : (n_j, bs, oup_t)    sigmoid(fc1) even/odd channels (resident)
    # mask    : (kkin, 1)  f32      0/1 fc2 row-parity mask          (resident)
    # w2      : (n_j, kkin, oup_t)  pre-permuted fc2 weight          (resident)
    # x       : (1, H, W, inp)      current sample, NHWC, compute dtype
    # o       : (1, Ho*Wo, oup_t)   lane-dense f32 output tile
    # xpad    : (Hp, Wp, inp)       VMEM scratch, zero-padded sample
    # slab    : (Ho*Wo, kkin)       VMEM scratch, im2col slab (built at j == 0)
    b = pl.program_id(0)
    j = pl.program_id(1)

    # ---- once per sample: zero pad border + copy interior + build im2col slab ----
    @pl.when(j == 0)
    def _build_slab():
        Hp = H + 2 * pad
        Wp = W + 2 * pad
        zdt = xpad_ref.dtype
        if pad > 0:  # zero only the border; the interior is fully overwritten below
            xpad_ref[0:pad, :, :] = jnp.zeros((pad, Wp, inp), zdt)
            xpad_ref[pad + H:Hp, :, :] = jnp.zeros((pad, Wp, inp), zdt)
            xpad_ref[pad:pad + H, 0:pad, :] = jnp.zeros((H, pad, inp), zdt)
            xpad_ref[pad:pad + H, pad + W:Wp, :] = jnp.zeros((H, pad, inp), zdt)
        xpad_ref[pad:pad + H, pad:pad + W, :] = x_ref[0]

        if S == 1:
            # Slice tap windows straight from the ref (no full-value load).
            for ky in range(K):
                for kx in range(K):
                    t = ky * K + kx
                    win = xpad_ref[ky:ky + Ho, kx:kx + Wo, :]
                    slab_ref[:, t * inp:(t + 1) * inp] = win.reshape(Ho * Wo, inp)
        else:
            # TODO(synk): use strided ref loads (pl.ds(..., stride=S)) or per-parity
            #             decimated copies to avoid this full-value load for S > 1.
            xp = xpad_ref[...]
            for ky in range(K):
                for kx in range(K):
                    t = ky * K + kx
                    win = lax.slice(
                        xp, (ky, kx, 0),
                        (ky + (Ho - 1) * S + 1, kx + (Wo - 1) * S + 1, inp),
                        (S, S, 1))
                    slab_ref[:, t * inp:(t + 1) * inp] = win.reshape(Ho * Wo, inp)
        # TODO(synk): for 8 <= inp < 128, pack multiple taps per slab write so every
        #             store is a full 128-lane vst (writes here are masked otherwise).

    # ---- per step: gate the resident fc2 weights with this sample's sigmoid row,
    #      then a single MXU matmul over the full k*k*inp contraction --------------
    ve = ve_ref[j, pl.ds(b, 1), :]                       # (1, oup_t)
    vo = vo_ref[j, pl.ds(b, 1), :]                       # (1, oup_t)
    gate = jnp.where(mask_ref[...] > 0.5, vo, ve)        # (kkin, oup_t), compute dtype
    w = w2_ref[j] * gate                                 # per-sample conv weight tile
    acc = jnp.dot(slab_ref[...], w, preferred_element_type=jnp.float32)
    o_ref[0] = acc.astype(o_ref.dtype)


# ---------------------------------------------------------------------------
# Wrapper: fc1+sigmoid, static parameter re-layout (tiny, one-time) + pallas_call
# ---------------------------------------------------------------------------
def weightnet_forward(x, x_gap, params, *, inp, oup, ksize, stride,
                      compute_dtype=jnp.bfloat16, oup_tile=None,
                      vmem_limit_bytes=64 * 1024 * 1024):
    K, S = ksize, stride
    pad = K // 2
    bs, _, H, W = x.shape
    inp_gap = x_gap.shape[1]
    rep = (inp * K * K) // G                 # fc2 outputs per group (G*oup groups)
    Ho = (H + 2 * pad - K) // S + 1
    Wo = (W + 2 * pad - K) // S + 1
    Hp, Wp = H + 2 * pad, W + 2 * pad
    kkin = K * K * inp

    # Output-channel tiling: lane-dense, MXU-width tiles.  128 matches v5e's
    # 128-wide MXU; pass oup_tile=256 on v6e/v7x for wide oup.
    if oup_tile is None:
        oup_tile = 128 if oup <= 128 else 256
    oup_t = oup_tile
    oup_p = _round_up(oup, oup_t)
    n_j = oup_p // oup_t

    w1 = params["wn_fc1_w"].reshape(M * oup, inp_gap)      # (2*oup, inp_gap)
    b1 = params["wn_fc1_b"].reshape(M * oup)
    w2 = params["wn_fc2_w"].reshape(oup, inp, K, K)        # [o, i, ky, kx]

    # fc1 + sigmoid hoisted out of the kernel (tiny).
    v = jax.nn.sigmoid(x_gap.reshape(bs, inp_gap) @ w1.T + b1[None, :])   # (bs, 2*oup)

    pad_c = ((0, 0), (0, oup_p - oup))

    def tile_cols(a):          # (bs, oup) -> (n_j, bs, oup_t): resident, j on a lead dim
        a = jnp.pad(a, pad_c).astype(compute_dtype)
        return a.reshape(bs, n_j, oup_t).swapaxes(0, 1)

    # Even / odd fc1 channels == the two fc2 groups of each output channel (M=G=2).
    ve = tile_cols(v[:, 0::2])
    vo = tile_cols(v[:, 1::2])

    # fc2 weight pre-permuted once to the final matmul layout (p, o),
    # p = (ky*K + kx)*inp + i, then column-tiled as (n_j, kkin, oup_t)  (resident).
    w2_mat = jnp.transpose(w2, (2, 3, 1, 0)).reshape(kkin, oup)
    w2_til = (jnp.pad(w2_mat, pad_c).astype(compute_dtype)
              .reshape(kkin, n_j, oup_t).swapaxes(0, 1))

    # Row-parity mask: row p uses the "high" fc2 group iff i*K*K + ky*K + kx >= rep.
    j_idx = (jnp.arange(inp)[:, None, None] * K * K
             + jnp.arange(K)[None, :, None] * K
             + jnp.arange(K)[None, None, :])               # (inp, K, K)
    mask = (jnp.transpose(j_idx >= rep, (1, 2, 0))
            .reshape(kkin, 1).astype(jnp.float32))

    # TODO(synk): keep activations NHWC (and bf16) upstream to drop this transpose.
    x_nhwc = jnp.transpose(x, (0, 2, 3, 1)).astype(compute_dtype)   # (bs, H, W, inp)

    kern = functools.partial(
        weightnet_kernel, K=K, S=S, H=H, W=W, Ho=Ho, Wo=Wo, inp=inp, pad=pad)

    out_p = pl.pallas_call(
        kern,
        out_shape=jax.ShapeDtypeStruct((bs, Ho * Wo, oup_p), jnp.float32),
        grid=(bs, n_j),
        in_specs=[
            pl.BlockSpec((n_j, bs, oup_t), lambda b, j: (0, 0, 0)),    # ve (resident)
            pl.BlockSpec((n_j, bs, oup_t), lambda b, j: (0, 0, 0)),    # vo (resident)
            pl.BlockSpec((kkin, 1), lambda b, j: (0, 0)),              # parity mask
            pl.BlockSpec((n_j, kkin, oup_t), lambda b, j: (0, 0, 0)),  # w2 (resident)
            pl.BlockSpec((1, H, W, inp), lambda b, j: (b, 0, 0, 0)),   # x (per sample)
        ],
        out_specs=pl.BlockSpec((1, Ho * Wo, oup_t), lambda b, j: (b, 0, j)),
        scratch_shapes=[
            pltpu.VMEM((Hp, Wp, inp), compute_dtype),      # zero-padded sample
            pltpu.VMEM((Ho * Wo, kkin), compute_dtype),    # im2col slab (built at j==0)
        ],
        compiler_params=pltpu.CompilerParams(
            # Axis 1 MUST be "arbitrary": the xpad/slab scratches are built at j == 0
            # and reused by every j of the same sample on the same core.
            dimension_semantics=("parallel", "arbitrary"),
            # Per-chip tuning: raise to ~96-110 MiB on v5e/v6e, lower to ~48-56 MiB
            # (plus an Ho-row halo axis) on v7x at production sizes.
            vmem_limit_bytes=vmem_limit_bytes),
    )(ve, vo, mask, w2_til, x_nhwc)

    out = out_p[:, :, :oup].reshape(bs, Ho, Wo, oup)       # crop lane padding
    return jnp.transpose(out, (0, 3, 1, 2))                # NCHW (module semantics)


# ---------------------------------------------------------------------------
# Pure-JAX reference (mirrors the torch forward exactly) for verification
# ---------------------------------------------------------------------------
def weightnet_reference(x, x_gap, params, *, inp, oup, ksize, stride):
    pad = ksize // 2
    bs = x.shape[0]
    inp_gap = x_gap.shape[1]
    rep = (inp * ksize * ksize) // G
    w1 = params["wn_fc1_w"].reshape(M * oup, inp_gap)
    b1 = params["wn_fc1_b"].reshape(M * oup)
    w2 = params["wn_fc2_w"].reshape(-1)

    v = jax.nn.sigmoid(x_gap.reshape(bs, inp_gap) @ w1.T + b1[None, :])
    x_w = w2[None, :] * jnp.repeat(v, rep, axis=1)            # (bs, oup*inp*k*k)
    w = x_w.reshape(bs * oup, inp, ksize, ksize)
    xr = x.reshape(1, bs * inp, x.shape[2], x.shape[3])
    out = lax.conv_general_dilated(
        xr, w,
        window_strides=(stride, stride),
        padding=[(pad, pad), (pad, pad)],
        dimension_numbers=("NCHW", "OIHW", "NCHW"),
        feature_group_count=bs,
    )
    return out.reshape(bs, oup, out.shape[2], out.shape[3])


if __name__ == "__main__":
    def run_case(bs, inp, oup, ksize, stride, H, W, compute_dtype, atol, rtol,
                 oup_tile=None):
        inp_gap = max(16, inp // 16)
        key = jax.random.PRNGKey(0)
        k1, k2, k3, k4, k5 = jax.random.split(key, 5)
        x = jax.random.normal(k1, (bs, inp, H, W), jnp.float32)
        x_gap = jax.random.normal(k2, (bs, inp_gap, 1, 1), jnp.float32)
        params = {
            "wn_fc1_w": 0.1 * jax.random.normal(k3, (M * oup, inp_gap, 1, 1), jnp.float32),
            "wn_fc1_b": 0.1 * jax.random.normal(k4, (M * oup,), jnp.float32),
            "wn_fc2_w": 0.1 * jax.random.normal(
                k5, (oup * inp * ksize * ksize, 1, 1, 1), jnp.float32),
        }
        out = weightnet_forward(x, x_gap, params, inp=inp, oup=oup, ksize=ksize,
                                stride=stride, compute_dtype=compute_dtype,
                                oup_tile=oup_tile)
        out = jax.block_until_ready(out)
        ref = weightnet_reference(x, x_gap, params, inp=inp, oup=oup,
                                  ksize=ksize, stride=stride)
        assert out.shape == ref.shape, (out.shape, ref.shape)
        err = float(jnp.max(jnp.abs(out - ref)))
        assert jnp.allclose(out, ref, atol=atol, rtol=rtol), err

    # Exact-math checks (f32 MXU operands): stride 1, stride 2, k=5 (pad=2 border).
    run_case(2, 4, 4, 3, 1, 16, 16, jnp.float32, 1e-3, 1e-3)
    run_case(2, 4, 4, 3, 2, 16, 16, jnp.float32, 1e-3, 1e-3)
    run_case(2, 4, 4, 5, 1, 16, 16, jnp.float32, 1e-3, 1e-3)
    # Multi-tile output channels (n_j = 2): exercises resident-weight j indexing and
    # the build-slab-once-per-sample reuse across j.
    run_case(2, 4, 160, 3, 1, 16, 16, jnp.float32, 1e-3, 1e-3, oup_tile=128)
    # Fast path: bf16 MXU operands with f32 accumulation (default).
    run_case(2, 4, 4, 3, 1, 16, 16, jnp.bfloat16, 5e-2, 5e-2)

    print("KERNEL_OK")
</pallas_src>

<mosaic_0001>
module attributes {stable_mosaic.version = 11 : i64} {
  func.func @weightnet_kernel(%arg0: i32, %arg1: i32, %arg2: memref<1x2x128xf32, #tpu.memory_space<vmem>>, %arg3: memref<1x2x128xf32, #tpu.memory_space<vmem>>, %arg4: memref<36x1xf32, #tpu.memory_space<vmem>>, %arg5: memref<1x36x128xf32, #tpu.memory_space<vmem>>, %arg6: memref<1x16x16x4xf32, #tpu.memory_space<vmem>>, %arg7: memref<1x256x128xf32, #tpu.memory_space<vmem>>, %arg8: memref<18x18x4xf32, #tpu.memory_space<vmem>>, %arg9: memref<256x36xf32, #tpu.memory_space<vmem>>) attributes {dimension_semantics = [#tpu.dimension_semantics<parallel>, #tpu.dimension_semantics<arbitrary>], iteration_bounds = array<i64: 2, 1>, scalar_prefetch = 0 : i64, scratch_operands = 2 : i64, tpu.core_type = #tpu.core_type<tc>, window_params = [{pipeline_mode = #tpu.pipeline_mode<synchronous>, transform_indices = @transform_0, window_bounds = array<i64: 1, 2, 128>}, {pipeline_mode = #tpu.pipeline_mode<synchronous>, transform_indices = @transform_1, window_bounds = array<i64: 1, 2, 128>}, {pipeline_mode = #tpu.pipeline_mode<synchronous>, transform_indices = @transform_2, window_bounds = array<i64: 36, 1>}, {pipeline_mode = #tpu.pipeline_mode<synchronous>, transform_indices = @transform_3, window_bounds = array<i64: 1, 36, 128>}, {transform_indices = @transform_4, window_bounds = array<i64: 1, 16, 16, 4>}, {transform_indices = @transform_5, window_bounds = array<i64: 1, 256, 128>}]} {
    %c0_i32 = arith.constant 0 : i32
    %0 = arith.cmpi eq, %arg1, %c0_i32 : i32
    %1 = arith.extui %0 : i1 to i32
    %c0_i32_0 = arith.constant 0 : i32
    %2 = arith.cmpi ne, %1, %c0_i32_0 : i32
    scf.if %2 {
      %cst_12 = arith.constant 0.000000e+00 : f32
      %30 = vector.broadcast %cst_12 : f32 to vector<1x18x4xf32>
      %c0_13 = arith.constant 0 : index
      %c0_14 = arith.constant 0 : index
      %c0_15 = arith.constant 0 : index
      %31 = vector.load %arg8[%c0_13, %c0_14, %c0_15] : memref<18x18x4xf32, #tpu.memory_space<vmem>>, vector<1x18x4xf32>
      tpu.vector_store %arg8[%c0_13, %c0_14, %c0_15], %30 {strides = array<i32>} : memref<18x18x4xf32, #tpu.memory_space<vmem>>, vector<1x18x4xf32>,
      %cst_16 = arith.constant 0.000000e+00 : f32
      %32 = vector.broadcast %cst_16 : f32 to vector<1x18x4xf32>
      %c17 = arith.constant 17 : index
      %c0_17 = arith.constant 0 : index
      %c0_18 = arith.constant 0 : index
      %33 = vector.load %arg8[%c17, %c0_17, %c0_18] : memref<18x18x4xf32, #tpu.memory_space<vmem>>, vector<1x18x4xf32>
      tpu.vector_store %arg8[%c17, %c0_17, %c0_18], %32 {strides = array<i32>} : memref<18x18x4xf32, #tpu.memory_space<vmem>>, vector<1x18x4xf32>,
      %cst_19 = arith.constant 0.000000e+00 : f32
      %34 = vector.broadcast %cst_19 : f32 to vector<16x1x4xf32>
      %c1 = arith.constant 1 : index
      %c0_20 = arith.constant 0 : index
      %c0_21 = arith.constant 0 : index
      %35 = vector.load %arg8[%c1, %c0_20, %c0_21] : memref<18x18x4xf32, #tpu.memory_space<vmem>>, vector<16x1x4xf32>
      tpu.vector_store %arg8[%c1, %c0_20, %c0_21], %34 {strides = array<i32>} : memref<18x18x4xf32, #tpu.memory_space<vmem>>, vector<16x1x4xf32>,
      %cst_22 = arith.constant 0.000000e+00 : f32
      %36 = vector.broadcast %cst_22 : f32 to vector<16x1x4xf32>
      %c1_23 = arith.constant 1 : index
      %c17_24 = arith.constant 17 : index
      %c0_25 = arith.constant 0 : index
      %37 = vector.load %arg8[%c1_23, %c17_24, %c0_25] : memref<18x18x4xf32, #tpu.memory_space<vmem>>, vector<16x1x4xf32>
      tpu.vector_store %arg8[%c1_23, %c17_24, %c0_25], %36 {strides = array<i32>} : memref<18x18x4xf32, #tpu.memory_space<vmem>>, vector<16x1x4xf32>,
      %c0_26 = arith.constant 0 : index
      %c0_27 = arith.constant 0 : index
      %c0_28 = arith.constant 0 : index
      %c0_29 = arith.constant 0 : index
      %38 = vector.load %arg6[%c0_26, %c0_27, %c0_28, %c0_29] : memref<1x16x16x4xf32, #tpu.memory_space<vmem>>, vector<1x16x16x4xf32>
      %39 = vector.shape_cast %38 : vector<1x16x16x4xf32> to vector<16x16x4xf32>
      %c1_30 = arith.constant 1 : index
      %c1_31 = arith.constant 1 : index
      %c0_32 = arith.constant 0 : index
      %40 = vector.load %arg8[%c1_30, %c1_31, %c0_32] : memref<18x18x4xf32, #tpu.memory_space<vmem>>, vector<16x16x4xf32>
      tpu.vector_store %arg8[%c1_30, %c1_31, %c0_32], %39 {strides = array<i32>} : memref<18x18x4xf32, #tpu.memory_space<vmem>>, vector<16x16x4xf32>,
      %c0_33 = arith.constant 0 : index
      %c0_34 = arith.constant 0 : index
      %c0_35 = arith.constant 0 : index
      %41 = vector.load %arg8[%c0_33, %c0_34, %c0_35] : memref<18x18x4xf32, #tpu.memory_space<vmem>>, vector<16x16x4xf32>
      %42 = vector.shape_cast %41 : vector<16x16x4xf32> to vector<256x4xf32>
      %c0_36 = arith.constant 0 : index
      %c0_37 = arith.constant 0 : index
      %43 = vector.load %arg9[%c0_36, %c0_37] : memref<256x36xf32, #tpu.memory_space<vmem>>, vector<256x4xf32>
      tpu.vector_store %arg9[%c0_36, %c0_37], %42 {strides = array<i32>} : memref<256x36xf32, #tpu.memory_space<vmem>>, vector<256x4xf32>,
      %c0_38 = arith.constant 0 : index
      %c1_39 = arith.constant 1 : index
      %c0_40 = arith.constant 0 : index
      %44 = vector.load %arg8[%c0_38, %c1_39, %c0_40] : memref<18x18x4xf32, #tpu.memory_space<vmem>>, vector<16x16x4xf32>
      %45 = vector.shape_cast %44 : vector<16x16x4xf32> to vector<256x4xf32>
      %c0_41 = arith.constant 0 : index
      %c4 = arith.constant 4 : index
      %46 = vector.load %arg9[%c0_41, %c4] : memref<256x36xf32, #tpu.memory_space<vmem>>, vector<256x4xf32>
      tpu.vector_store %arg9[%c0_41, %c4], %45 {strides = array<i32>} : memref<256x36xf32, #tpu.memory_space<vmem>>, vector<256x4xf32>,
      %c0_42 = arith.constant 0 : index
      %c2 = arith.constant 2 : index
      %c0_43 = arith.constant 0 : index
      %47 = vector.load %arg8[%c0_42, %c2, %c0_43] : memref<18x18x4xf32, #tpu.memory_space<vmem>>, vector<16x16x4xf32>
      %48 = vector.shape_cast %47 : vector<16x16x4xf32> to vector<256x4xf32>
      %c0_44 = arith.constant 0 : index
      %c8 = arith.constant 8 : index
      %49 = vector.load %arg9[%c0_44, %c8] : memref<256x36xf32, #tpu.memory_space<vmem>>, vector<256x4xf32>
      tpu.vector_store %arg9[%c0_44, %c8], %48 {strides = array<i32>} : memref<256x36xf32, #tpu.memory_space<vmem>>, vector<256x4xf32>,
      %c1_45 = arith.constant 1 : index
      %c0_46 = arith.constant 0 : index
      %c0_47 = arith.constant 0 : index
      %50 = vector.load %arg8[%c1_45, %c0_46, %c0_47] : memref<18x18x4xf32, #tpu.memory_space<vmem>>, vector<16x16x4xf32>
      %51 = vector.shape_cast %50 : vector<16x16x4xf32> to vector<256x4xf32>
      %c0_48 = arith.constant 0 : index
      %c12 = arith.constant 12 : index
      %52 = vector.load %arg9[%c0_48, %c12] : memref<256x36xf32, #tpu.memory_space<vmem>>, vector<256x4xf32>
      tpu.vector_store %arg9[%c0_48, %c12], %51 {strides = array<i32>} : memref<256x36xf32, #tpu.memory_space<vmem>>, vector<256x4xf32>,
      %c1_49 = arith.constant 1 : index
      %c1_50 = arith.constant 1 : index
      %c0_51 = arith.constant 0 : index
      %53 = vector.load %arg8[%c1_49, %c1_50, %c0_51] : memref<18x18x4xf32, #tpu.memory_space<vmem>>, vector<16x16x4xf32>
      %54 = vector.shape_cast %53 : vector<16x16x4xf32> to vector<256x4xf32>
      %c0_52 = arith.constant 0 : index
      %c16 = arith.constant 16 : index
      %55 = vector.load %arg9[%c0_52, %c16] : memref<256x36xf32, #tpu.memory_space<vmem>>, vector<256x4xf32>
      tpu.vector_store %arg9[%c0_52, %c16], %54 {strides = array<i32>} : memref<256x36xf32, #tpu.memory_space<vmem>>, vector<256x4xf32>,
      %c1_53 = arith.constant 1 : index
      %c2_54 = arith.constant 2 : index
      %c0_55 = arith.constant 0 : index
      %56 = vector.load %arg8[%c1_53, %c2_54, %c0_55] : memref<18x18x4xf32, #tpu.memory_space<vmem>>, vector<16x16x4xf32>
      %57 = vector.shape_cast %56 : vector<16x16x4xf32> to vector<256x4xf32>
      %c0_56 = arith.constant 0 : index
      %c20 = arith.constant 20 : index
      %58 = vector.load %arg9[%c0_56, %c20] : memref<256x36xf32, #tpu.memory_space<vmem>>, vector<256x4xf32>
      tpu.vector_store %arg9[%c0_56, %c20], %57 {strides = array<i32>} : memref<256x36xf32, #tpu.memory_space<vmem>>, vector<256x4xf32>,
      %c2_57 = arith.constant 2 : index
      %c0_58 = arith.constant 0 : index
      %c0_59 = arith.constant 0 : index
      %59 = vector.load %arg8[%c2_57, %c0_58, %c0_59] : memref<18x18x4xf32, #tpu.memory_space<vmem>>, vector<16x16x4xf32>
      %60 = vector.shape_cast %59 : vector<16x16x4xf32> to vector<256x4xf32>
      %c0_60 = arith.constant 0 : index
      %c24 = arith.constant 24 : index
      %61 = vector.load %arg9[%c0_60, %c24] : memref<256x36xf32, #tpu.memory_space<vmem>>, vector<256x4xf32>
      tpu.vector_store %arg9[%c0_60, %c24], %60 {strides = array<i32>} : memref<256x36xf32, #tpu.memory_space<vmem>>, vector<256x4xf32>,
      %c2_61 = arith.constant 2 : index
      %c1_62 = arith.constant 1 : index
      %c0_63 = arith.constant 0 : index
      %62 = vector.load %arg8[%c2_61, %c1_62, %c0_63] : memref<18x18x4xf32, #tpu.memory_space<vmem>>, vector<16x16x4xf32>
      %63 = vector.shape_cast %62 : vector<16x16x4xf32> to vector<256x4xf32>
      %c0_64 = arith.constant 0 : index
      %c28 = arith.constant 28 : index
      %64 = vector.load %arg9[%c0_64, %c28] : memref<256x36xf32, #tpu.memory_space<vmem>>, vector<256x4xf32>
      tpu.vector_store %arg9[%c0_64, %c28], %63 {strides = array<i32>} : memref<256x36xf32, #tpu.memory_space<vmem>>, vector<256x4xf32>,
      %c2_65 = arith.constant 2 : index
      %c2_66 = arith.constant 2 : index
      %c0_67 = arith.constant 0 : index
      %65 = vector.load %arg8[%c2_65, %c2_66, %c0_67] : memref<18x18x4xf32, #tpu.memory_space<vmem>>, vector<16x16x4xf32>
      %66 = vector.shape_cast %65 : vector<16x16x4xf32> to vector<256x4xf32>
      %c0_68 = arith.constant 0 : index
      %c32 = arith.constant 32 : index
      %67 = vector.load %arg9[%c0_68, %c32] : memref<256x36xf32, #tpu.memory_space<vmem>>, vector<256x4xf32>
      tpu.vector_store %arg9[%c0_68, %c32], %66 {strides = array<i32>} : memref<256x36xf32, #tpu.memory_space<vmem>>, vector<256x4xf32>,
    } else {
    }
    %3 = arith.index_cast %arg1 : i32 to index
    %4 = arith.index_cast %arg0 : i32 to index
    %c0 = arith.constant 0 : index
    %5 = vector.load %arg2[%3, %4, %c0] : memref<1x2x128xf32, #tpu.memory_space<vmem>>, vector<1x1x128xf32>
    %6 = vector.shape_cast %5 : vector<1x1x128xf32> to vector<1x128xf32>
    %7 = arith.index_cast %arg1 : i32 to index
    %8 = arith.index_cast %arg0 : i32 to index
    %c0_1 = arith.constant 0 : index
    %9 = vector.load %arg3[%7, %8, %c0_1] : memref<1x2x128xf32, #tpu.memory_space<vmem>>, vector<1x1x128xf32>
    %10 = vector.shape_cast %9 : vector<1x1x128xf32> to vector<1x128xf32>
    %c0_2 = arith.constant 0 : index
    %c0_3 = arith.constant 0 : index
    %11 = vector.load %arg4[%c0_2, %c0_3] : memref<36x1xf32, #tpu.memory_space<vmem>>, vector<36x1xf32>
    %cst = arith.constant 5.000000e-01 : f32
    %12 = vector.broadcast %cst : f32 to vector<36x1xf32>
    %13 = arith.cmpf ogt, %11, %12 : vector<36x1xf32>
    %14 = vector.shape_cast %13 : vector<36x1xi1> to vector<36x1xi1>
    %15 = vector.broadcast %14 : vector<36x1xi1> to vector<36x128xi1>
    %16 = vector.shape_cast %10 : vector<1x128xf32> to vector<1x128xf32>
    %17 = vector.broadcast %16 : vector<1x128xf32> to vector<36x128xf32>
    %18 = vector.shape_cast %6 : vector<1x128xf32> to vector<1x128xf32>
    %19 = vector.broadcast %18 : vector<1x128xf32> to vector<36x128xf32>
    %20 = arith.select %15, %17, %19 : vector<36x128xi1>, vector<36x128xf32>
    %21 = arith.index_cast %arg1 : i32 to index
    %c0_4 = arith.constant 0 : index
    %c0_5 = arith.constant 0 : index
    %22 = vector.load %arg5[%21, %c0_4, %c0_5] : memref<1x36x128xf32, #tpu.memory_space<vmem>>, vector<1x36x128xf32>
    %23 = vector.shape_cast %22 : vector<1x36x128xf32> to vector<36x128xf32>
    %24 = arith.mulf %23, %20 : vector<36x128xf32>
    %c0_6 = arith.constant 0 : index
    %c0_7 = arith.constant 0 : index
    %25 = vector.load %arg9[%c0_6, %c0_7] : memref<256x36xf32, #tpu.memory_space<vmem>>, vector<256x36xf32>
    %cst_8 = arith.constant dense<0.000000e+00> : vector<256x128xf32>
    %26 = tpu.matmul %25, %24, %cst_8 {dimension_numbers = #tpu.dot_dimension_numbers<[1], [0], [0], [1], [0, 0, 1, 1], [], []>} : vector<256x36xf32>, vector<36x128xf32>, vector<256x128xf32> -> vector<256x128xf32>
    %c0_9 = arith.constant 0 : index
    %c0_10 = arith.constant 0 : index
    %c0_11 = arith.constant 0 : index
    %27 = vector.load %arg7[%c0_9, %c0_10, %c0_11] : memref<1x256x128xf32, #tpu.memory_space<vmem>>, vector<1x256x128xf32>
    %28 = vector.shape_cast %27 : vector<1x256x128xf32> to vector<256x128xf32>
    %29 = vector.shape_cast %26 : vector<256x128xf32> to vector<1x256x128xf32>
    tpu.vector_store %arg7[%c0_9, %c0_10, %c0_11], %29 {strides = array<i32>} : memref<1x256x128xf32, #tpu.memory_space<vmem>>, vector<1x256x128xf32>,
    return
  }
  func.func @transform_0(%arg0: i32, %arg1: i32) -> (i32, i32, i32) {
    %c0_i32 = arith.constant 0 : i32
    %c0_i32_0 = arith.constant 0 : i32
    %c0_i32_1 = arith.constant 0 : i32
    %c0_i32_2 = arith.constant 0 : i32
    return %c0_i32, %c0_i32_0, %c0_i32_1 : i32, i32, i32
  }
  func.func @transform_1(%arg0: i32, %arg1: i32) -> (i32, i32, i32) {
    %c0_i32 = arith.constant 0 : i32
    %c0_i32_0 = arith.constant 0 : i32
    %c0_i32_1 = arith.constant 0 : i32
    %c0_i32_2 = arith.constant 0 : i32
    return %c0_i32, %c0_i32_0, %c0_i32_1 : i32, i32, i32
  }
  func.func @transform_2(%arg0: i32, %arg1: i32) -> (i32, i32) {
    %c0_i32 = arith.constant 0 : i32
    %c0_i32_0 = arith.constant 0 : i32
    %c0_i32_1 = arith.constant 0 : i32
    return %c0_i32, %c0_i32_0 : i32, i32
  }
  func.func @transform_3(%arg0: i32, %arg1: i32) -> (i32, i32, i32) {
    %c0_i32 = arith.constant 0 : i32
    %c0_i32_0 = arith.constant 0 : i32
    %c0_i32_1 = arith.constant 0 : i32
    %c0_i32_2 = arith.constant 0 : i32
    return %c0_i32, %c0_i32_0, %c0_i32_1 : i32, i32, i32
  }
  func.func @transform_4(%arg0: i32, %arg1: i32) -> (i32, i32, i32, i32) {
    %c0_i32 = arith.constant 0 : i32
    %c0_i32_0 = arith.constant 0 : i32
    %c0_i32_1 = arith.constant 0 : i32
    %c0_i32_2 = arith.constant 0 : i32
    return %arg0, %c0_i32, %c0_i32_0, %c0_i32_1 : i32, i32, i32, i32
  }
  func.func @transform_5(%arg0: i32, %arg1: i32) -> (i32, i32, i32) {
    %c0_i32 = arith.constant 0 : i32
    %c0_i32_0 = arith.constant 0 : i32
    return %arg0, %c0_i32, %arg1 : i32, i32, i32
  }
}

</mosaic_0001>

<bundles_post_ra>
// kernel: tpu_custom_call.1
= control target key start
LH: loop header
LB: loop body
LE: loop exit
PB: predicated region body
PF: predicated region fallthrough
CT: control target
= control target key end

     0   :  { %10 = vsyncpa [#allocation5], 0  ;;  %s4008_s0 = inlined_call_operand.vmem [shape: f32[1,2,128], index: 0, kind: input, shape index: {}]   ;;  %s4009_s1 = inlined_call_operand.vmem [shape: f32[1,2,128], index: 1, kind: input, shape index: {}]   ;;  %s4010_s2 = inlined_call_operand.vmem [shape: f32[36,1], index: 2, kind: input, shape index: {}]   ;;  %s4011_s3 = inlined_call_operand.vmem [shape: f32[1,36,128], index: 3, kind: input, shape index: {}]   ;;  %s4012_s4 = inlined_call_operand.vmem [shape: f32[2,16,16,4], index: 4, kind: input, shape index: {}]   ;;  %s4013_s5 = inlined_call_operand.hbm [shape: f32[2,256,128], index: 5, kind: output, shape index: {}]  }
   0x1   :  { %12 = vsyncpa [#allocation5 + $0x1], 0  ;;  %s2851_s18 = smov 0   ;;  %s2853_s19 = smov 0  }
   0x2   :  { %s2855_s20 = smov 0   ;;  %s2857_s21 = smov 0  }
   0x3   :  { %s2859_s22 = smov 0   ;;  %s2861_s23 = smov 0  }
   0x4 LB: > { %s2508_s24 = sadd.s32 4294967295, %s2807_s23   ;;  %s2509_s25 = sadd.s32 4294967294, %s2807_s23   ;;  %s2807_s23 = sphi %s2861_s23, %s18_s23   ;;  %s2803_s22 = sphi %s2859_s22, %s4050_s22   ;;  %s2799_s21 = sphi %s2857_s21, %s4049_s21   ;;  %s2795_s20 = sphi %s2855_s20, %s4048_s20   ;;  %s2791_s19 = sphi %s2853_s19, %s4047_s19   ;;  %s2787_s18 = sphi %s2851_s18, %s4046_s18  }
   0x5   : > { %s30_s26 = sadd.s32 1, %s2803_s22  ;;  %s149_s27 = sadd.s32 1, %s2795_s20 }
   0x6   : > { %p32_p0 = scmp.ge.s32.totalorder %s30_s26, 2  ;;  %p159_p1 = scmp.ne.s32.totalorder %s2795_s20, %s2791_s19 }
   0x7   : > { %p160_p2 = scmp.eq.s32.totalorder %s2508_s24, 1  ;;  %p165_p3 = scmp.ne.s32.totalorder %s2791_s19, %s2787_s18 }
   0x8   : > { %s4052_s26 = smov (%p32_p0, %s30_s26), 0  ;;  %p166_p5 = scmp.eq.s32.totalorder %s2509_s25, 1 }
   0x9   : > { %p2891_p4 = por %p160_p2, %p159_p1  ;;  %s144_s29 = ssub.s32 %s2803_s22, %s4052_s26 }
   0xa   : > { %p2512_p6 = scmp.ge.s32.totalorder %s2807_s23, 1  ;;  %p147_p7 = scmp.eq.s32.totalorder %s144_s29, 0 }
   0xb   : > { %p2898_p8 = por %p166_p5, %p165_p3  ;;  %p204_p9 = scmp.lt.s32.totalorder %s2807_s23, 3 }
   0xc   : > { %s2904_s6 = scalar_select %p147_p7, %s2795_s20, %s149_s27  }
   0xd   : > { %p205_p10 = pnand %p2512_p6, %p204_p9 }
   0xf   : > { %208 = sbr.rel (%p205_p10) target bundleno = 909 (0x38d), region = 40 }
  0x14   : > { %vm241_vm0 = vcmask 31744   ;;  %p232_p11 = scmp.lt.s32.totalorder %s2799_s21, 1  ;;  %vm244_vm1 = vcmask 25600   ;;  %vm251_vm2 = vcmask 24576   ;;  %v2809_v0 = vmov 0.0   ;;  %s2810_s12 = smov 4  }
  0x15   : > { %242 = vst.msk [vmem:[#allocation2] sm:$0xff] %vm241_vm0, %v2809_v0  ;;  %243 = vst.msk [vmem:[#allocation2 + $0x8] sm:$0xff] %vm241_vm0, %v2809_v0  ;;  %s2811_s13 = smov 8   ;;  %vm572_vm3 = vcmask 64544   ;;  %s2813_s14 = smov 12   ;;  %vm765_vm4 = vcmask 97344  }
  0x16   : > { %247 = vst.msk [vmem:[#allocation2 + $0x198] sm:$0xff] %vm241_vm0, %v2809_v0  ;;  %248 = vst.msk [vmem:[#allocation2 + $0x1a0] sm:$0xff] %vm241_vm0, %v2809_v0  ;;  %s233_s7 = scalar_select %p232_p11, %s2799_s21, 1  ;;  %vm958_vm9 = vcmask 130144   ;;  %vm1151_vm11 = vcmask 162944   ;;  %vm2152_vm13 = vcmask 1043456  }
  0x17   : > { %245 = vst.msk [vmem:[#allocation2 + $0x10] sm:$0x3] %vm244_vm1, %v2809_v0  ;;  %249 = vst.msk [vmem:[#allocation2 + $0x1a8] sm:$0x3] %vm244_vm1, %v2809_v0  ;;  %s2814_s15 = smov 16   ;;  %s2815_s9 = smov 20  }
  0x18   : > { %268 = vst.msk [vmem:[#allocation2 + $0x29] sm:$0x1] %vm251_vm2, %v2809_v0  ;;  %252 = vst.msk [vmem:[#allocation2 + $0x18] sm:$0x1] %vm251_vm2, %v2809_v0  ;;  %s2556_s8 = sshll.u32 %s233_s7, 8  ;;  %s2816_s10 = smov 24  }
  0x19   : > { %253 = vst.msk [vmem:[#allocation2 + $0x30] sm:$0x1] %vm251_vm2, %v2809_v0  ;;  %254 = vst.msk [vmem:[#allocation2 + $0x48] sm:$0x1] %vm251_vm2, %v2809_v0  ;;  %s2949_s11 = scalar_lea.vmem %s4012_s4, %s2556_s8  ;;  %s2818_s16 = smov 32   ;;  %vm1344_vm15 = vcmask 195744  }
  0x1a   : > { %255 = vst.msk [vmem:[#allocation2 + $0x60] sm:$0x1] %vm251_vm2, %v2809_v0  ;;  %256 = vst.msk [vmem:[#allocation2 + $0x78] sm:$0x1] %vm251_vm2, %v2809_v0  ;;  %v284_v1 = vld [vmem:[%s2949_s11] sm:$0xff]  ;;  %v285_v2 = vld [vmem:[%s2949_s11 + $0x8] sm:$0xff]  ;;  %s1959_s25 = scalar_lea.vmem %s4008_s0, %s2799_s21  ;;  %s1961_s7 = scalar_lea.vmem %s4009_s1, %s2799_s21 }
  0x1b   : > { %257 = vst.msk [vmem:[#allocation2 + $0x90] sm:$0x1] %vm251_vm2, %v2809_v0  ;;  %258 = vst.msk [vmem:[#allocation2 + $0xa8] sm:$0x1] %vm251_vm2, %v2809_v0  ;;  %v286_v3 = vld [vmem:[%s2949_s11 + $0x10] sm:$0xff]  ;;  %v287_v4 = vld [vmem:[%s2949_s11 + $0x18] sm:$0xff] }
  0x1c   : > { %259 = vst.msk [vmem:[#allocation2 + $0xc0] sm:$0x1] %vm251_vm2, %v2809_v0  ;;  %260 = vst.msk [vmem:[#allocation2 + $0xd8] sm:$0x1] %vm251_vm2, %v2809_v0  ;;  %v288_v5 = vld [vmem:[%s2949_s11 + $0x20] sm:$0xff]  ;;  %v289_v6 = vld [vmem:[%s2949_s11 + $0x28] sm:$0xff] }
  0x1d   : > { %261 = vst.msk [vmem:[#allocation2 + $0xf0] sm:$0x1] %vm251_vm2, %v2809_v0  ;;  %262 = vst.msk [vmem:[#allocation2 + $0x108] sm:$0x1] %vm251_vm2, %v2809_v0  ;;  %v412_v7 = vld [vmem:[#allocation2 + $0x1] sm:$0xff]  ;;  %v290_v9 = vld [vmem:[%s2949_s11 + $0x30] sm:$0xff] }
  0x1e   : > { %263 = vst.msk [vmem:[#allocation2 + $0x120] sm:$0x1] %vm251_vm2, %v2809_v0  ;;  %264 = vst.msk [vmem:[#allocation2 + $0x138] sm:$0x1] %vm251_vm2, %v2809_v0  ;;  %v413_v8 = vld [vmem:[#allocation2 + $0x9] sm:$0xff]  ;;  %476 = vrot.lane.b32.xlu0 %v412_v7, %s2810_s12  ;;  %v291_v10 = vld [vmem:[%s2949_s11 + $0x38] sm:$0xff] }
  0x1f   : > { %265 = vst.msk [vmem:[#allocation2 + $0x150] sm:$0x1] %vm251_vm2, %v2809_v0  ;;  %266 = vst.msk [vmem:[#allocation2 + $0x168] sm:$0x1] %vm251_vm2, %v2809_v0  ;;  %v292_v11 = vld [vmem:[%s2949_s11 + $0x40] sm:$0xff]  ;;  %v293_v12 = vld [vmem:[%s2949_s11 + $0x48] sm:$0xff] }
  0x20   : > { %267 = vst.msk [vmem:[#allocation2 + $0x180] sm:$0x1] %vm251_vm2, %v2809_v0  ;;  %269 = vst.msk [vmem:[#allocation2 + $0x41] sm:$0x1] %vm251_vm2, %v2809_v0  ;;  %v294_v13 = vld [vmem:[%s2949_s11 + $0x50] sm:$0xff]  ;;  %v295_v14 = vld [vmem:[%s2949_s11 + $0x58] sm:$0xff] }
  0x21   : > { %270 = vst.msk [vmem:[#allocation2 + $0x59] sm:$0x1] %vm251_vm2, %v2809_v0  ;;  %271 = vst.msk [vmem:[#allocation2 + $0x71] sm:$0x1] %vm251_vm2, %v2809_v0  ;;  %v296_v15 = vld [vmem:[%s2949_s11 + $0x60] sm:$0xff]  ;;  %v297_v16 = vld [vmem:[%s2949_s11 + $0x68] sm:$0xff] }
  0x22   : > { %272 = vst.msk [vmem:[#allocation2 + $0x89] sm:$0x1] %vm251_vm2, %v2809_v0  ;;  %273 = vst.msk [vmem:[#allocation2 + $0xa1] sm:$0x1] %vm251_vm2, %v2809_v0  ;;  %v298_v17 = vld [vmem:[%s2949_s11 + $0x70] sm:$0xff]  ;;  %v299_v18 = vld [vmem:[%s2949_s11 + $0x78] sm:$0xff]  ;;  %478 = vrot.lane.b32.xlu0 %v413_v8, %s2810_s12 }
  0x23   : > { %274 = vst.msk [vmem:[#allocation2 + $0xb9] sm:$0x1] %vm251_vm2, %v2809_v0  ;;  %275 = vst.msk [vmem:[#allocation2 + $0xd1] sm:$0x1] %vm251_vm2, %v2809_v0  ;;  %v300_v19 = vld [vmem:[%s2949_s11 + $0x80] sm:$0xff]  ;;  %v301_v20 = vld [vmem:[%s2949_s11 + $0x88] sm:$0xff] }
  0x24   : > { %276 = vst.msk [vmem:[#allocation2 + $0xe9] sm:$0x1] %vm251_vm2, %v2809_v0  ;;  %277 = vst.msk [vmem:[#allocation2 + $0x101] sm:$0x1] %vm251_vm2, %v2809_v0  ;;  %v302_v21 = vld [vmem:[%s2949_s11 + $0x90] sm:$0xff]  ;;  %v303_v22 = vld [vmem:[%s2949_s11 + $0x98] sm:$0xff] }
  0x25   : > { %278 = vst.msk [vmem:[#allocation2 + $0x119] sm:$0x1] %vm251_vm2, %v2809_v0  ;;  %279 = vst.msk [vmem:[#allocation2 + $0x131] sm:$0x1] %vm251_vm2, %v2809_v0  ;;  %v304_v23 = vld [vmem:[%s2949_s11 + $0xa0] sm:$0xff]  ;;  %v305_v24 = vld [vmem:[%s2949_s11 + $0xa8] sm:$0xff] }
  0x26   : > { %280 = vst.msk [vmem:[#allocation2 + $0x149] sm:$0x1] %vm251_vm2, %v2809_v0  ;;  %281 = vst.msk [vmem:[#allocation2 + $0x161] sm:$0x1] %vm251_vm2, %v2809_v0  ;;  %v306_v28 = vld [vmem:[%s2949_s11 + $0xb0] sm:$0xff]  ;;  %v307_v29 = vld [vmem:[%s2949_s11 + $0xb8] sm:$0xff] }
  0x27   : > { %282 = vst.msk [vmem:[#allocation2 + $0x179] sm:$0x1] %vm251_vm2, %v2809_v0  ;;  %283 = vst.msk [vmem:[#allocation2 + $0x191] sm:$0x1] %vm251_vm2, %v2809_v0  ;;  %v308_v33 = vld [vmem:[%s2949_s11 + $0xc0] sm:$0xff]  ;;  %v309_v34 = vld [vmem:[%s2949_s11 + $0xc8] sm:$0xff] }
  0x28   : > { %316 = vst.msk [vmem:[#allocation2 + $0x19] sm:$0xff] %vm241_vm0, %v284_v1  ;;  %317 = vst.msk [vmem:[#allocation2 + $0x21] sm:$0xff] %vm241_vm0, %v285_v2  ;;  %v310_v35 = vld [vmem:[%s2949_s11 + $0xd0] sm:$0xff]  ;;  %v311_v36 = vld [vmem:[%s2949_s11 + $0xd8] sm:$0xff]  ;;  %vm1538_vm2 = vcmask 228544  }
  0x29   : > { %318 = vst.msk [vmem:[#allocation2 + $0x31] sm:$0xff] %vm241_vm0, %v286_v3  ;;  %319 = vst.msk [vmem:[#allocation2 + $0x39] sm:$0xff] %vm241_vm0, %v287_v4  ;;  %v312_v37 = vld [vmem:[%s2949_s11 + $0xe0] sm:$0xff]  ;;  %v313_v38 = vld [vmem:[%s2949_s11 + $0xe8] sm:$0xff] }
  0x2a   : > { %320 = vst.msk [vmem:[#allocation2 + $0x49] sm:$0xff] %vm241_vm0, %v288_v5  ;;  %321 = vst.msk [vmem:[#allocation2 + $0x51] sm:$0xff] %vm241_vm0, %v289_v6  ;;  %v348_v47 = vld [vmem:[#allocation2] sm:$0xff]  ;;  %v349_v49 = vld [vmem:[#allocation2 + $0x8] sm:$0xff] }
  0x2b   : > { %322 = vst.msk [vmem:[#allocation2 + $0x61] sm:$0xff] %vm241_vm0, %v290_v9  ;;  %323 = vst.msk [vmem:[#allocation2 + $0x69] sm:$0xff] %vm241_vm0, %v291_v10 }
  0x2c   : > { %324 = vst.msk [vmem:[#allocation2 + $0x79] sm:$0xff] %vm241_vm0, %v292_v11  ;;  %325 = vst.msk [vmem:[#allocation2 + $0x81] sm:$0xff] %vm241_vm0, %v293_v12 }
  0x2d   : > { %326 = vst.msk [vmem:[#allocation2 + $0x91] sm:$0xff] %vm241_vm0, %v294_v13  ;;  %327 = vst.msk [vmem:[#allocation2 + $0x99] sm:$0xff] %vm241_vm0, %v295_v14 }
  0x2e   : > { %328 = vst.msk [vmem:[#allocation2 + $0xa9] sm:$0xff] %vm241_vm0, %v296_v15  ;;  %329 = vst.msk [vmem:[#allocation2 + $0xb1] sm:$0xff] %vm241_vm0, %v297_v16 }
  0x2f   : > { %330 = vst.msk [vmem:[#allocation2 + $0xc1] sm:$0xff] %vm241_vm0, %v298_v17  ;;  %331 = vst.msk [vmem:[#allocation2 + $0xc9] sm:$0xff] %vm241_vm0, %v299_v18  ;;  %v2994_v25 = vld [vmem:[#allocation2 + $0x19] sm:$0xff]  ;;  %v3003_v27 = vld [vmem:[#allocation2 + $0x21] sm:$0xff] }
  0x30   : > { %332 = vst.msk [vmem:[#allocation2 + $0xd9] sm:$0xff] %vm241_vm0, %v300_v19  ;;  %333 = vst.msk [vmem:[#allocation2 + $0xe1] sm:$0xff] %vm241_vm0, %v301_v20  ;;  %v2996_v26 = vld [vmem:[#allocation2 + $0x31] sm:$0xff]  ;;  %480 = vrot.lane.b32.xlu1 %v2994_v25, %s2810_s12  ;;  %v3015_v31 = vld [vmem:[#allocation2 + $0x39] sm:$0xff] }
  0x31   : > { %334 = vst.msk [vmem:[#allocation2 + $0xf1] sm:$0xff] %vm241_vm0, %v302_v21  ;;  %335 = vst.msk [vmem:[#allocation2 + $0xf9] sm:$0xff] %vm241_vm0, %v303_v22  ;;  %484 = vrot.lane.b32.xlu0 %v2996_v26, %s2810_s12  ;;  %v3011_v30 = vld [vmem:[#allocation2 + $0x49] sm:$0xff]  ;;  %v3032_v39 = vld [vmem:[#allocation2 + $0x51] sm:$0xff] }
  0x32   : > { %336 = vst.msk [vmem:[#allocation2 + $0x109] sm:$0xff] %vm241_vm0, %v304_v23  ;;  %337 = vst.msk [vmem:[#allocation2 + $0x111] sm:$0xff] %vm241_vm0, %v305_v24  ;;  %v3019_v32 = vld [vmem:[#allocation2 + $0x61] sm:$0xff]  ;;  %v3043_v41 = vld [vmem:[#allocation2 + $0x69] sm:$0xff] }
  0x33   : > { %338 = vst.msk [vmem:[#allocation2 + $0x121] sm:$0xff] %vm241_vm0, %v306_v28  ;;  %339 = vst.msk [vmem:[#allocation2 + $0x129] sm:$0xff] %vm241_vm0, %v307_v29  ;;  %v3039_v40 = vld [vmem:[#allocation2 + $0x79] sm:$0xff]  ;;  %v3051_v43 = vld [vmem:[#allocation2 + $0x81] sm:$0xff] }
  0x34   : > { %482 = vrot.lane.b32.xlu1 %v3003_v27, %s2810_s12  ;;  %340 = vst.msk [vmem:[#allocation2 + $0x139] sm:$0xff] %vm241_vm0, %v308_v33  ;;  %341 = vst.msk [vmem:[#allocation2 + $0x141] sm:$0xff] %vm241_vm0, %v309_v34  ;;  %v3047_v42 = vld [vmem:[#allocation2 + $0x91] sm:$0xff]  ;;  %v3061_v46 = vld [vmem:[#allocation2 + $0x99] sm:$0xff] }
  0x35   : > { %488 = vrot.lane.b32.xlu0 %v3011_v30, %s2810_s12  ;;  %342 = vst.msk [vmem:[#allocation2 + $0x151] sm:$0xff] %vm241_vm0, %v310_v35  ;;  %343 = vst.msk [vmem:[#allocation2 + $0x159] sm:$0xff] %vm241_vm0, %v311_v36  ;;  %v3055_v44 = vld [vmem:[#allocation2 + $0xa9] sm:$0xff]  ;;  %v3059_v45 = vld [vmem:[#allocation2 + $0x18] sm:$0xff] }
  0x36   : > { %344 = vst.msk [vmem:[#allocation2 + $0x169] sm:$0xff] %vm241_vm0, %v312_v37  ;;  %345 = vst.msk [vmem:[#allocation2 + $0x171] sm:$0xff] %vm241_vm0, %v313_v38  ;;  %v3068_v48 = vld [vmem:[#allocation2 + $0x20] sm:$0xff]  ;;  %v3070_v50 = vld [vmem:[#allocation2 + $0xb1] sm:$0xff] }
  0x37   : > { %382 = vst.msk [vmem:[#allocation3 + $0x10] sm:$0xff] %vm241_vm0, %v3059_v45  ;;  %380 = vst.msk [vmem:[#allocation3] sm:$0xff] %vm241_vm0, %v348_v47  ;;  %v3072_v51 = vld [vmem:[#allocation2 + $0xc1] sm:$0xff]  ;;  %v3077_v52 = vld [vmem:[#allocation2 + $0x38] sm:$0xff] }
  0x38   : > { %486 = vrot.lane.b32.xlu1 %v3015_v31, %s2810_s12  ;;  %383 = vst.msk [vmem:[#allocation3 + $0x18] sm:$0xff] %vm241_vm0, %v3068_v48  ;;  %381 = vst.msk [vmem:[#allocation3 + $0x8] sm:$0xff] %vm241_vm0, %v349_v49  ;;  %v3083_v53 = vld [vmem:[#allocation2 + $0x30] sm:$0xff]  ;;  %v3087_v55 = vld [vmem:[#allocation2 + $0x48] sm:$0xff] }
  0x39   : > { %492 = vrot.lane.b32.xlu0 %v3019_v32, %s2810_s12  ;;  %385 = vst.msk [vmem:[#allocation3 + $0x28] sm:$0xff] %vm241_vm0, %v3077_v52  ;;  %v3085_v54 = vld [vmem:[#allocation2 + $0x50] sm:$0xff]  ;;  %v3089_v56 = vld [vmem:[#allocation2 + $0xd9] sm:$0xff]  ;;  %384 = vst.msk [vmem:[#allocation3 + $0x20] sm:$0xff] %vm241_vm0, %v3083_v53 }
  0x3a   : > { %387 = vst.msk [vmem:[#allocation3 + $0x38] sm:$0xff] %vm241_vm0, %v3085_v54  ;;  %386 = vst.msk [vmem:[#allocation3 + $0x30] sm:$0xff] %vm241_vm0, %v3087_v55  ;;  %v3097_v57 = vld [vmem:[#allocation2 + $0x68] sm:$0xff]  ;;  %v3099_v58 = vld [vmem:[#allocation2 + $0x60] sm:$0xff] }
  0x3b   : > { %v3101_v59 = vld [vmem:[#allocation2 + $0x80] sm:$0xff]  ;;  %389 = vst.msk [vmem:[#allocation3 + $0x48] sm:$0xff] %vm241_vm0, %v3097_v57  ;;  %388 = vst.msk [vmem:[#allocation3 + $0x40] sm:$0xff] %vm241_vm0, %v3099_v58  ;;  %v3111_v60 = vld [vmem:[#allocation2 + $0x78] sm:$0xff] }
  0x3c   : > { %490 = vrot.lane.b32.xlu1 %v3032_v39, %s2810_s12  ;;  %391 = vst.msk [vmem:[#allocation3 + $0x58] sm:$0xff] %vm241_vm0, %v3101_v59  ;;  %v3113_v61 = vld [vmem:[#allocation2 + $0x98] sm:$0xff]  ;;  %v3115_v62 = vld [vmem:[#allocation2 + $0x90] sm:$0xff]  ;;  %390 = vst.msk [vmem:[#allocation3 + $0x50] sm:$0xff] %vm241_vm0, %v3111_v60 }
  0x3d   : > { %496 = vrot.lane.b32.xlu0 %v3039_v40, %s2810_s12  ;;  %v3117_v63 = vld [vmem:[#allocation2 + $0xc9] sm:$0xff]  ;;  %393 = vst.msk [vmem:[#allocation3 + $0x68] sm:$0xff] %vm241_vm0, %v3113_v61  ;;  %392 = vst.msk [vmem:[#allocation3 + $0x60] sm:$0xff] %vm241_vm0, %v3115_v62  ;;  %v3139_v3 = vld [vmem:[#allocation2 + $0xc0] sm:$0xff] }
  0x3e   : > { %v3125_v0 = vld [vmem:[#allocation2 + $0xb0] sm:$0xff]  ;;  %v3127_v1 = vld [vmem:[#allocation2 + $0xa8] sm:$0xff]  ;;  %v3141_v4 = vld [vmem:[#allocation2 + $0xe0] sm:$0xff]  ;;  %396 = vst.msk [vmem:[#allocation3 + $0x80] sm:$0xff] %vm241_vm0, %v3139_v3 }
  0x3f   : > { %v3129_v2 = vld [vmem:[#allocation2 + $0xc8] sm:$0xff]  ;;  %395 = vst.msk [vmem:[#allocation3 + $0x78] sm:$0xff] %vm241_vm0, %v3125_v0  ;;  %394 = vst.msk [vmem:[#allocation3 + $0x70] sm:$0xff] %vm241_vm0, %v3127_v1  ;;  %v3143_v5 = vld [vmem:[#allocation2 + $0xd8] sm:$0xff] }
  0x40   : > { %494 = vrot.lane.b32.xlu1 %v3043_v41, %s2810_s12  ;;  %397 = vst.msk [vmem:[#allocation3 + $0x88] sm:$0xff] %vm241_vm0, %v3129_v2  ;;  %399 = vst.msk [vmem:[#allocation3 + $0x98] sm:$0xff] %vm241_vm0, %v3141_v4  ;;  %v3151_v6 = vld [vmem:[#allocation2 + $0xf8] sm:$0xff]  ;;  %v3153_v7 = vld [vmem:[#allocation2 + $0xf0] sm:$0xff] }
  0x41   : > { %500 = vrot.lane.b32.xlu0 %v3047_v42, %s2810_s12  ;;  %398 = vst.msk [vmem:[#allocation3 + $0x90] sm:$0xff] %vm241_vm0, %v3143_v5  ;;  %v3155_v8 = vld [vmem:[#allocation2 + $0x110] sm:$0xff]  ;;  %401 = vst.msk [vmem:[#allocation3 + $0xa8] sm:$0xff] %vm241_vm0, %v3151_v6  ;;  %v3169_v10 = vld [vmem:[#allocation2 + $0x108] sm:$0xff] }
  0x42   : > { %400 = vst.msk [vmem:[#allocation3 + $0xa0] sm:$0xff] %vm241_vm0, %v3153_v7  ;;  %403 = vst.msk [vmem:[#allocation3 + $0xb8] sm:$0xff] %vm241_vm0, %v3155_v8  ;;  %v3165_v9 = vld [vmem:[#allocation2 + $0xf1] sm:$0xff]  ;;  %v3171_v11 = vld [vmem:[#allocation2 + $0x128] sm:$0xff] }
  0x43   : > { %v3173_v12 = vld [vmem:[#allocation2 + $0xe1] sm:$0xff]  ;;  %402 = vst.msk [vmem:[#allocation3 + $0xb0] sm:$0xff] %vm241_vm0, %v3169_v10  ;;  %405 = vst.msk [vmem:[#allocation3 + $0xc8] sm:$0xff] %vm241_vm0, %v3171_v11  ;;  %v434_v13 = vld [vmem:[#allocation2 + $0x109] sm:$0xff] }
  0x44   : > { %498 = vrot.lane.b32.xlu1 %v3051_v43, %s2810_s12  ;;  %v3183_v14 = vld [vmem:[#allocation2 + $0x120] sm:$0xff]  ;;  %v3196_v18 = vld [vmem:[#allocation2 + $0x138] sm:$0xff]  ;;  %v3206_v22 = vld [vmem:[#allocation2 + $0x150] sm:$0xff] }
  0x45   : > { %504 = vrot.lane.b32.xlu0 %v3055_v44, %s2810_s12  ;;  %v3185_v15 = vld [vmem:[#allocation2 + $0x140] sm:$0xff]  ;;  %404 = vst.msk [vmem:[#allocation3 + $0xc0] sm:$0xff] %vm241_vm0, %v3183_v14  ;;  %v3198_v19 = vld [vmem:[#allocation2 + $0x158] sm:$0xff]  ;;  %406 = vst.msk [vmem:[#allocation3 + $0xd0] sm:$0xff] %vm241_vm0, %v3196_v18 }
  0x46   : > { %v3187_v16 = vld [vmem:[#allocation2 + $0xf9] sm:$0xff]  ;;  %407 = vst.msk [vmem:[#allocation3 + $0xd8] sm:$0xff] %vm241_vm0, %v3185_v15  ;;  %v436_v17 = vld [vmem:[#allocation2 + $0x121] sm:$0xff]  ;;  %v435_v20 = vld [vmem:[#allocation2 + $0x111] sm:$0xff] }
  0x47   : > { %409 = vst.msk [vmem:[#allocation3 + $0xe8] sm:$0xff] %vm241_vm0, %v3198_v19  ;;  %v438_v21 = vld [vmem:[#allocation2 + $0x139] sm:$0xff]  ;;  %v3208_v23 = vld [vmem:[#allocation2 + $0x170] sm:$0xff]  ;;  %408 = vst.msk [vmem:[#allocation3 + $0xe0] sm:$0xff] %vm241_vm0, %v3206_v22 }
  0x48   : > { %502 = vrot.lane.b32.xlu1 %v3061_v46, %s2810_s12  ;;  %v437_v24 = vld [vmem:[#allocation2 + $0x129] sm:$0xff]  ;;  %411 = vst.msk [vmem:[#allocation3 + $0xf8] sm:$0xff] %vm241_vm0, %v3208_v23  ;;  %v440_v28 = vld [vmem:[#allocation2 + $0x151] sm:$0xff]  ;;  %v439_v33 = vld [vmem:[#allocation2 + $0x141] sm:$0xff] }
  0x49   : > { %508 = vrot.lane.b32.xlu0 %v3072_v51, %s2810_s12  ;;  %v3216_v29 = vld [vmem:[#allocation2 + $0x168] sm:$0xff]  ;;  %v314_v34 = vld [vmem:[%s2949_s11 + $0xf0] sm:$0xff]  ;;  %v315_v36 = vld [vmem:[%s2949_s11 + $0xf8] sm:$0xff] }
  0x4a   : > { %410 = vst.msk [vmem:[#allocation3 + $0xf0] sm:$0xff] %vm241_vm0, %v3216_v29  ;;  %346 = vst.msk [vmem:[#allocation2 + $0x181] sm:$0xff] %vm241_vm0, %v314_v34  ;;  %v442_v35 = vld [vmem:[#allocation2 + $0x169] sm:$0xff]  ;;  %v441_v37 = vld [vmem:[#allocation2 + $0x159] sm:$0xff] }
  0x4b   : > { %347 = vst.msk [vmem:[#allocation2 + $0x189] sm:$0xff] %vm241_vm0, %v315_v36  ;;  %v605_v38 = vld [vmem:[#allocation2 + $0x2] sm:$0xff]  ;;  %v443_v47 = vld [vmem:[#allocation2 + $0x171] sm:$0xff]  ;;  %v3229_v49 = vld [vmem:[#allocation2 + $0x1a] sm:$0xff] }
  0x4c   : > { %506 = vrot.lane.b32.xlu1 %v3070_v50, %s2810_s12  ;;  %v615_v34 = vld [vmem:[#allocation2 + $0x7a] sm:$0xff]  ;;  %v617_v36 = vld [vmem:[#allocation2 + $0x92] sm:$0xff] }
  0x4d   : > { %512 = vrot.lane.b32.xlu0 %v3089_v56, %s2810_s12 }
  0x50   : > { %510 = vrot.lane.b32.xlu1 %v3117_v63, %s2810_s12 }
  0x51   : > { %516 = vrot.lane.b32.xlu0 %v3165_v9, %s2810_s12 }
  0x54   : > { %514 = vrot.lane.b32.xlu1 %v3173_v12, %s2810_s12 }
  0x55   : > { %520 = vrot.lane.b32.xlu0 %v434_v13, %s2810_s12  ;;  %v606_v13 = vld [vmem:[#allocation2 + $0xa] sm:$0xff] }
  0x58   : > { %518 = vrot.lane.b32.xlu1 %v3187_v16, %s2810_s12 }
  0x59   : > { %524 = vrot.lane.b32.xlu0 %v436_v17, %s2810_s12  ;;  %v3234_v17 = vld [vmem:[#allocation2 + $0x32] sm:$0xff] }
  0x5a   : > { %4031 = vst [vmem:[#allocation7_spill] sm:$0xff] %v3234_v17 }
  0x5c   : > { %522 = vrot.lane.b32.xlu1 %v435_v20, %s2810_s12  ;;  %v3237_v20 = vld [vmem:[#allocation2 + $0x22] sm:$0xff] }
  0x5d   : > { %528 = vrot.lane.b32.xlu0 %v438_v21, %s2810_s12  ;;  %v3241_v21 = vld [vmem:[#allocation2 + $0x4a] sm:$0xff] }
  0x5e   : > { %4032 = vst [vmem:[#allocation8_spill] sm:$0xff] %v3241_v21 }
  0x60   : > { %526 = vrot.lane.b32.xlu1 %v437_v24, %s2810_s12  ;;  %v3245_v24 = vld [vmem:[#allocation2 + $0x3a] sm:$0xff] }
  0x61   : > { %532 = vrot.lane.b32.xlu0 %v440_v28, %s2810_s12  ;;  %4033 = vst [vmem:[#allocation9_spill] sm:$0xff] %v3245_v24  ;;  %v613_v28 = vld [vmem:[#allocation2 + $0x62] sm:$0xff] }
  0x64   : > { %530 = vrot.lane.b32.xlu1 %v439_v33, %s2810_s12  ;;  %v612_v33 = vld [vmem:[#allocation2 + $0x52] sm:$0xff] }
  0x65   : > { %536 = vrot.lane.b32.xlu0 %v442_v35, %s2810_s12  ;;  %v614_v35 = vld [vmem:[#allocation2 + $0x6a] sm:$0xff] }
  0x68   : > { %534 = vrot.lane.b32.xlu1 %v441_v37, %s2810_s12  ;;  %v616_v37 = vld [vmem:[#allocation2 + $0x82] sm:$0xff] }
  0x69   : > { %669 = vrot.lane.b32.xlu0 %v605_v38, %s2811_s13  ;;  %v619_v38 = vld [vmem:[#allocation2 + $0xaa] sm:$0xff] }
  0x6c   : > { %538 = vrot.lane.b32.xlu1 %v443_v47, %s2810_s12  ;;  %v618_v47 = vld [vmem:[#allocation2 + $0x9a] sm:$0xff] }
  0x6d   : > { %673 = vrot.lane.b32.xlu0 %v3229_v49, %s2811_s13 }
  0x70   : > { %671 = vrot.lane.b32.xlu1 %v606_v13, %s2811_s13  ;;  %v621_v13 = vld [vmem:[#allocation2 + $0xc2] sm:$0xff] }
  0x71   : > { %677 = vrot.lane.b32.xlu0 %v3234_v17, %s2811_s13  ;;  %v634_v17 = vld [vmem:[#allocation2 + $0x15a] sm:$0xff] }
  0x74   : > { %675 = vrot.lane.b32.xlu1 %v3237_v20, %s2811_s13 }
  0x75   : > { %681 = vrot.lane.b32.xlu0 %v3241_v21, %s2811_s13 }
  0x78   : > { %679 = vrot.lane.b32.xlu1 %v3245_v24, %s2811_s13 }
  0x79   : > { %685 = vrot.lane.b32.xlu0 %v613_v28, %s2811_s13  ;;  %v620_v28 = vld [vmem:[#allocation2 + $0xb2] sm:$0xff] }
  0x7c   : > { %683 = vrot.lane.b32.xlu1 %v612_v33, %s2811_s13  ;;  %v3260_v33 = vld [vmem:[#allocation2 + $0xda] sm:$0xff] }
  0x7d   : > { %689 = vrot.lane.b32.xlu0 %v615_v34, %s2811_s13  ;;  %v622_v34 = vld [vmem:[#allocation2 + $0xca] sm:$0xff] }
  0x80   : > { %687 = vrot.lane.b32.xlu1 %v614_v35, %s2811_s13  ;;  %v3265_v35 = vld [vmem:[#allocation2 + $0xf2] sm:$0xff] }
  0x81   : > { %693 = vrot.lane.b32.xlu0 %v617_v36, %s2811_s13  ;;  %4034 = vst [vmem:[#allocation10_spill] sm:$0xff] %v3265_v35  ;;  %v3268_v36 = vld [vmem:[#allocation2 + $0xe2] sm:$0xff] }
  0x84   : > { %691 = vrot.lane.b32.xlu1 %v616_v37, %s2811_s13  ;;  %v3272_v37 = vld [vmem:[#allocation2 + $0x10a] sm:$0xff] }
  0x85   : > { %697 = vrot.lane.b32.xlu0 %v619_v38, %s2811_s13  ;;  %4035 = vst [vmem:[#allocation11_spill] sm:$0xff] %v3272_v37  ;;  %v3276_v38 = vld [vmem:[#allocation2 + $0xfa] sm:$0xff] }
  0x86   : > { %4036 = vst [vmem:[#allocation12_spill] sm:$0xff] %v3276_v38 }
  0x88   : > { %695 = vrot.lane.b32.xlu1 %v618_v47, %s2811_s13  ;;  %v4017_v47 = vmov 0  }
  0x89   : > { %701 = vrot.lane.b32.xlu0 %v621_v13, %s2811_s13  ;;  %2730 = vset.pattern.permute.xlu1 %v4017_v47  ;;  %v629_v13 = vld [vmem:[#allocation2 + $0x122] sm:$0xff] }
  0x8a   : > { %2729 = vset.pattern.permute.xlu0 %v4017_v47  ;;  %v633_v47 = vld [vmem:[#allocation2 + $0x152] sm:$0xff] }
  0x8c   : > { %699 = vrot.lane.b32.xlu1 %v620_v28, %s2811_s13  ;;  %v3284_v28 = vld [vmem:[#allocation2 + $0x112] sm:$0xff] }
  0x8d   : > { %705 = vrot.lane.b32.xlu0 %v3260_v33, %s2811_s13  ;;  %4037 = vst [vmem:[#allocation13_spill] sm:$0xff] %v3284_v28 }
  0x90   : > { %703 = vrot.lane.b32.xlu1 %v622_v34, %s2811_s13  ;;  %v631_v34 = vld [vmem:[#allocation2 + $0x13a] sm:$0xff]  ;;  %v477_v21 = vpop.permute.xlu0 %476 }
  0x91   : > { %709 = vrot.lane.b32.xlu0 %v3265_v35, %s2811_s13  ;;  %v630_v35 = vld [vmem:[#allocation2 + $0x12a] sm:$0xff]  ;;  %573 = vst.msk [vmem:[#allocation3] sm:$0xff] %vm572_vm3, %v477_v21 }
  0x94   : > { %707 = vrot.lane.b32.xlu1 %v3268_v36, %s2811_s13 }
  0x95   : > { %713 = vrot.lane.b32.xlu0 %v3272_v37, %s2811_s13  ;;  %v479_v37 = vpop.permute.xlu0 %478 }
  0x96   : > { %574 = vst.msk [vmem:[#allocation3 + $0x8] sm:$0xff] %vm572_vm3, %v479_v37  ;;  %v636_v37 = vld [vmem:[#allocation2 + $0x172] sm:$0xff] }
  0x98   : > { %711 = vrot.lane.b32.xlu1 %v3276_v38, %s2811_s13  ;;  %v632_v38 = vld [vmem:[#allocation2 + $0x142] sm:$0xff] }
  0x99   : > { %717 = vrot.lane.b32.xlu0 %v629_v13, %s2811_s13  ;;  %v635_v13 = vld [vmem:[#allocation2 + $0x16a] sm:$0xff] }
  0x9c   : > { %715 = vrot.lane.b32.xlu1 %v3284_v28, %s2811_s13 }
  0x9d   : > { %721 = vrot.lane.b32.xlu0 %v631_v34, %s2811_s13 }
  0xa0   : > { %719 = vrot.lane.b32.xlu1 %v630_v35, %s2811_s13 }
  0xa1   : > { %725 = vrot.lane.b32.xlu0 %v633_v47, %s2811_s13 }
  0xa2   : > { %v481_v24 = vpop.permute.xlu1 %480 }
  0xa3   : > { %575 = vst.msk [vmem:[#allocation3 + $0x10] sm:$0xff] %vm572_vm3, %v481_v24  ;;  %v485_v28 = vpop.permute.xlu0 %484 }
  0xa4   : > { %723 = vrot.lane.b32.xlu1 %v632_v38, %s2811_s13  ;;  %577 = vst.msk [vmem:[#allocation3 + $0x20] sm:$0xff] %vm572_vm3, %v485_v28 }
  0xa5   : > { %729 = vrot.lane.b32.xlu0 %v635_v13, %s2811_s13 }
  0xa6   : > { %v483_v21 = vpop.permute.xlu1 %482 }
  0xa7   : > { %576 = vst.msk [vmem:[#allocation3 + $0x18] sm:$0xff] %vm572_vm3, %v483_v21  ;;  %v489_v35 = vpop.permute.xlu0 %488 }
  0xa8   : > { %727 = vrot.lane.b32.xlu1 %v634_v17, %s2811_s13  ;;  %579 = vst.msk [vmem:[#allocation3 + $0x30] sm:$0xff] %vm572_vm3, %v489_v35 }
  0xa9   : > { %862 = vrot.lane.b32.xlu0 %v3059_v45, %s2813_s14 }
  0xaa   : > { %v487_v47 = vpop.permute.xlu1 %486 }
  0xab   : > { %578 = vst.msk [vmem:[#allocation3 + $0x28] sm:$0xff] %vm572_vm3, %v487_v47  ;;  %v493_v24 = vpop.permute.xlu0 %492 }
  0xac   : > { %731 = vrot.lane.b32.xlu1 %v636_v37, %s2811_s13  ;;  %581 = vst.msk [vmem:[#allocation3 + $0x40] sm:$0xff] %vm572_vm3, %v493_v24 }
  0xad   : > { %866 = vrot.lane.b32.xlu0 %v3083_v53, %s2813_s14 }
  0xae   : > { %v491_v38 = vpop.permute.xlu1 %490 }
  0xaf   : > { %580 = vst.msk [vmem:[#allocation3 + $0x38] sm:$0xff] %vm572_vm3, %v491_v38  ;;  %v497_v17 = vpop.permute.xlu0 %496 }
  0xb0   : > { %864 = vrot.lane.b32.xlu1 %v3068_v48, %s2813_s14  ;;  %583 = vst.msk [vmem:[#allocation3 + $0x50] sm:$0xff] %vm572_vm3, %v497_v17 }
  0xb1   : > { %870 = vrot.lane.b32.xlu0 %v3087_v55, %s2813_s14 }
  0xb2   : > { %v495_v45 = vpop.permute.xlu1 %494 }
  0xb3   : > { %582 = vst.msk [vmem:[#allocation3 + $0x48] sm:$0xff] %vm572_vm3, %v495_v45  ;;  %v501_v28 = vpop.permute.xlu0 %500 }
  0xb4   : > { %868 = vrot.lane.b32.xlu1 %v3077_v52, %s2813_s14  ;;  %585 = vst.msk [vmem:[#allocation3 + $0x60] sm:$0xff] %vm572_vm3, %v501_v28 }
  0xb5   : > { %874 = vrot.lane.b32.xlu0 %v3099_v58, %s2813_s14 }
  0xb6   : > { %v499_v34 = vpop.permute.xlu1 %498 }
  0xb7   : > { %584 = vst.msk [vmem:[#allocation3 + $0x58] sm:$0xff] %vm572_vm3, %v499_v34  ;;  %v505_v48 = vpop.permute.xlu0 %504 }
  0xb8   : > { %872 = vrot.lane.b32.xlu1 %v3085_v54, %s2813_s14  ;;  %587 = vst.msk [vmem:[#allocation3 + $0x70] sm:$0xff] %vm572_vm3, %v505_v48  ;;  %v828_v48 = vld [vmem:[#allocation2 + $0x180] sm:$0xff] }
  0xb9   : > { %878 = vrot.lane.b32.xlu0 %v3111_v60, %s2813_s14 }
  0xba   : > { %v503_v13 = vpop.permute.xlu1 %502 }
  0xbb   : > { %586 = vst.msk [vmem:[#allocation3 + $0x68] sm:$0xff] %vm572_vm3, %v503_v13  ;;  %v509_v21 = vpop.permute.xlu0 %508 }
  0xbc   : > { %876 = vrot.lane.b32.xlu1 %v3097_v57, %s2813_s14  ;;  %589 = vst.msk [vmem:[#allocation3 + $0x80] sm:$0xff] %vm572_vm3, %v509_v21 }
  0xbd   : > { %882 = vrot.lane.b32.xlu0 %v3115_v62, %s2813_s14 }
  0xbe   : > { %v507_v35 = vpop.permute.xlu1 %506 }
  0xbf   : > { %588 = vst.msk [vmem:[#allocation3 + $0x78] sm:$0xff] %vm572_vm3, %v507_v35  ;;  %v513_v37 = vpop.permute.xlu0 %512  ;;  %v829_v35 = vld [vmem:[#allocation2 + $0x188] sm:$0xff] }
  0xc0   : > { %880 = vrot.lane.b32.xlu1 %v3101_v59, %s2813_s14  ;;  %591 = vst.msk [vmem:[#allocation3 + $0x90] sm:$0xff] %vm572_vm3, %v513_v37 }
  0xc1   : > { %886 = vrot.lane.b32.xlu0 %v3127_v1, %s2813_s14 }
  0xc2   : > { %v511_v60 = vpop.permute.xlu1 %510 }
  0xc3   : > { %590 = vst.msk [vmem:[#allocation3 + $0x88] sm:$0xff] %vm572_vm3, %v511_v60  ;;  %v517_v47 = vpop.permute.xlu0 %516 }
  0xc4   : > { %884 = vrot.lane.b32.xlu1 %v3113_v61, %s2813_s14  ;;  %593 = vst.msk [vmem:[#allocation3 + $0xa0] sm:$0xff] %vm572_vm3, %v517_v47 }
  0xc5   : > { %890 = vrot.lane.b32.xlu0 %v3139_v3, %s2813_s14 }
  0xc6   : > { %v515_v62 = vpop.permute.xlu1 %514 }
  0xc7   : > { %592 = vst.msk [vmem:[#allocation3 + $0x98] sm:$0xff] %vm572_vm3, %v515_v62  ;;  %v521_v59 = vpop.permute.xlu0 %520 }
  0xc8   : > { %888 = vrot.lane.b32.xlu1 %v3125_v0, %s2813_s14  ;;  %595 = vst.msk [vmem:[#allocation3 + $0xb0] sm:$0xff] %vm572_vm3, %v521_v59 }
  0xc9   : > { %894 = vrot.lane.b32.xlu0 %v3143_v5, %s2813_s14 }
  0xca   : > { %v519_v1 = vpop.permute.xlu1 %518 }
  0xcb   : > { %594 = vst.msk [vmem:[#allocation3 + $0xa8] sm:$0xff] %vm572_vm3, %v519_v1  ;;  %v525_v61 = vpop.permute.xlu0 %524 }
  0xcc   : > { %892 = vrot.lane.b32.xlu1 %v3129_v2, %s2813_s14  ;;  %597 = vst.msk [vmem:[#allocation3 + $0xc0] sm:$0xff] %vm572_vm3, %v525_v61  ;;  %v1965_v61 = vld [vmem:[%s4010_s2 + $0x10] sm:$0xff] }
  0xcd   : > { %898 = vrot.lane.b32.xlu0 %v3153_v7, %s2813_s14  ;;  %vm1970_vm8 = vcmp.gt.f32.partialorder %v1965_v61, 0.5 }
  0xce   : > { %v523_v3 = vpop.permute.xlu1 %522 }
  0xcf   : > { %596 = vst.msk [vmem:[#allocation3 + $0xb8] sm:$0xff] %vm572_vm3, %v523_v3  ;;  %v529_v0 = vpop.permute.xlu0 %528 }
  0xd0   : > { %896 = vrot.lane.b32.xlu1 %v3141_v4, %s2813_s14  ;;  %599 = vst.msk [vmem:[#allocation3 + $0xd0] sm:$0xff] %vm572_vm3, %v529_v0 }
  0xd1   : > { %902 = vrot.lane.b32.xlu0 %v3169_v10, %s2813_s14 }
  0xd2   : > { %v527_v5 = vpop.permute.xlu1 %526 }
  0xd3   : > { %598 = vst.msk [vmem:[#allocation3 + $0xc8] sm:$0xff] %vm572_vm3, %v527_v5  ;;  %v533_v2 = vpop.permute.xlu0 %532 }
  0xd4   : > { %900 = vrot.lane.b32.xlu1 %v3151_v6, %s2813_s14  ;;  %601 = vst.msk [vmem:[#allocation3 + $0xe0] sm:$0xff] %vm572_vm3, %v533_v2 }
  0xd5   : > { %906 = vrot.lane.b32.xlu0 %v3183_v14, %s2813_s14 }
  0xd6   : > { %v531_v24 = vpop.permute.xlu1 %530 }
  0xd7   : > { %600 = vst.msk [vmem:[#allocation3 + $0xd8] sm:$0xff] %vm572_vm3, %v531_v24  ;;  %v537_v4 = vpop.permute.xlu0 %536 }
  0xd8   : > { %904 = vrot.lane.b32.xlu1 %v3155_v8, %s2813_s14  ;;  %603 = vst.msk [vmem:[#allocation3 + $0xf0] sm:$0xff] %vm572_vm3, %v537_v4 }
  0xd9   : > { %910 = vrot.lane.b32.xlu0 %v3196_v18, %s2813_s14 }
  0xda   : > { %v535_v38 = vpop.permute.xlu1 %534 }
  0xdb   : > { %602 = vst.msk [vmem:[#allocation3 + $0xe8] sm:$0xff] %vm572_vm3, %v535_v38  ;;  %v670_v17 = vpop.permute.xlu0 %669 }
  0xdc   : > { %908 = vrot.lane.b32.xlu1 %v3171_v11, %s2813_s14  ;;  %766 = vst.msk [vmem:[#allocation3] sm:$0xff] %vm765_vm4, %v670_v17  ;;  %v1963_v17 = vld [vmem:[%s4010_s2] sm:$0xff] }
  0xdd   : > { %914 = vrot.lane.b32.xlu0 %v3206_v22, %s2813_s14  ;;  %vm1968_vm10 = vcmp.gt.f32.partialorder %v1963_v17, 0.5 }
  0xde   : > { %v539_v45 = vpop.permute.xlu1 %538 }
  0xdf   : > { %604 = vst.msk [vmem:[#allocation3 + $0xf8] sm:$0xff] %vm572_vm3, %v539_v45  ;;  %v674_v28 = vpop.permute.xlu0 %673  ;;  %vm1731_vm3 = vcmask 261344  }
  0xe0   : > { %912 = vrot.lane.b32.xlu1 %v3185_v15, %s2813_s14  ;;  %768 = vst.msk [vmem:[#allocation3 + $0x10] sm:$0xff] %vm765_vm4, %v674_v28 }
  0xe1   : > { %918 = vrot.lane.b32.xlu0 %v3216_v29, %s2813_s14 }
  0xe2   : > { %v672_v34 = vpop.permute.xlu1 %671 }
  0xe3   : > { %767 = vst.msk [vmem:[#allocation3 + $0x8] sm:$0xff] %vm765_vm4, %v672_v34  ;;  %v678_v13 = vpop.permute.xlu0 %677  ;;  %v1572_v34 = vld [vmem:[#allocation2 + $0x39] sm:$0xff] }
  0xe4   : > { %916 = vrot.lane.b32.xlu1 %v3198_v19, %s2813_s14  ;;  %770 = vst.msk [vmem:[#allocation3 + $0x20] sm:$0xff] %vm765_vm4, %v678_v13  ;;  %v1587_v13 = vld [vmem:[#allocation2 + $0xf1] sm:$0xff] }
  0xe5   : > { %922 = vrot.lane.b32.xlu0 %v828_v48, %s2813_s14 }
  0xe6   : > { %v676_v22 = vpop.permute.xlu1 %675 }
  0xe7   : > { %769 = vst.msk [vmem:[#allocation3 + $0x18] sm:$0xff] %vm765_vm4, %v676_v22  ;;  %v682_v21 = vpop.permute.xlu0 %681 }
  0xe8   : > { %920 = vrot.lane.b32.xlu1 %v3208_v23, %s2813_s14  ;;  %772 = vst.msk [vmem:[#allocation3 + $0x30] sm:$0xff] %vm765_vm4, %v682_v21  ;;  %v4039_v21 = vld [vmem:[#allocation7_spill] sm:$0xff] }
  0xe9   : > { %1055 = vrot.lane.b32.xlu0 %v2994_v25, %s2814_s15 }
  0xea   : > { %v680_v29 = vpop.permute.xlu1 %679 }
  0xeb   : > { %771 = vst.msk [vmem:[#allocation3 + $0x28] sm:$0xff] %vm765_vm4, %v680_v29  ;;  %v686_v19 = vpop.permute.xlu0 %685  ;;  %v1588_v29 = vld [vmem:[#allocation2 + $0xf9] sm:$0xff] }
  0xec   : > { %924 = vrot.lane.b32.xlu1 %v829_v35, %s2813_s14  ;;  %774 = vst.msk [vmem:[#allocation3 + $0x40] sm:$0xff] %vm765_vm4, %v686_v19  ;;  %s2817_s14 = smov 28  }
  0xed   : > { %1059 = vrot.lane.b32.xlu0 %v2996_v26, %s2814_s15 }
  0xee   : > { %v684_v37 = vpop.permute.xlu1 %683 }
  0xef   : > { %773 = vst.msk [vmem:[#allocation3 + $0x38] sm:$0xff] %vm765_vm4, %v684_v37  ;;  %v690_v23 = vpop.permute.xlu0 %689 }
  0xf0   : > { %1057 = vrot.lane.b32.xlu1 %v3003_v27, %s2814_s15  ;;  %776 = vst.msk [vmem:[#allocation3 + $0x50] sm:$0xff] %vm765_vm4, %v690_v23  ;;  %v4040_v23 = vld [vmem:[#allocation9_spill] sm:$0xff] }
  0xf1   : > { %1063 = vrot.lane.b32.xlu0 %v3011_v30, %s2814_s15 }
  0xf2   : > { %v688_v25 = vpop.permute.xlu1 %687 }
  0xf3   : > { %775 = vst.msk [vmem:[#allocation3 + $0x48] sm:$0xff] %vm765_vm4, %v688_v25  ;;  %v694_v60 = vpop.permute.xlu0 %693  ;;  %v4041_v25 = vld [vmem:[#allocation10_spill] sm:$0xff] }
  0xf4   : > { %1061 = vrot.lane.b32.xlu1 %v3015_v31, %s2814_s15  ;;  %778 = vst.msk [vmem:[#allocation3 + $0x60] sm:$0xff] %vm765_vm4, %v694_v60 }
  0xf5   : > { %1067 = vrot.lane.b32.xlu0 %v3019_v32, %s2814_s15 }
  0xf6   : > { %v692_v26 = vpop.permute.xlu1 %691 }
  0xf7   : > { %777 = vst.msk [vmem:[#allocation3 + $0x58] sm:$0xff] %vm765_vm4, %v692_v26  ;;  %v698_v27 = vpop.permute.xlu0 %697 }
  0xf8   : > { %1065 = vrot.lane.b32.xlu1 %v3032_v39, %s2814_s15  ;;  %780 = vst.msk [vmem:[#allocation3 + $0x70] sm:$0xff] %vm765_vm4, %v698_v27 }
  0xf9   : > { %1071 = vrot.lane.b32.xlu0 %v3039_v40, %s2814_s15 }
  0xfa   : > { %v696_v30 = vpop.permute.xlu1 %695 }
  0xfb   : > { %779 = vst.msk [vmem:[#allocation3 + $0x68] sm:$0xff] %vm765_vm4, %v696_v30  ;;  %v702_v31 = vpop.permute.xlu0 %701 }
  0xfc   : > { %1069 = vrot.lane.b32.xlu1 %v3043_v41, %s2814_s15  ;;  %782 = vst.msk [vmem:[#allocation3 + $0x80] sm:$0xff] %vm765_vm4, %v702_v31  ;;  %v4042_v31 = vld [vmem:[#allocation12_spill] sm:$0xff] }
  0xfd   : > { %1075 = vrot.lane.b32.xlu0 %v3047_v42, %s2814_s15 }
  0xfe   : > { %v700_v32 = vpop.permute.xlu1 %699 }
  0xff   : > { %781 = vst.msk [vmem:[#allocation3 + $0x78] sm:$0xff] %vm765_vm4, %v700_v32  ;;  %v706_v39 = vpop.permute.xlu0 %705 }
 0x100   : > { %1073 = vrot.lane.b32.xlu1 %v3051_v43, %s2814_s15  ;;  %784 = vst.msk [vmem:[#allocation3 + $0x90] sm:$0xff] %vm765_vm4, %v706_v39 }
 0x101   : > { %1079 = vrot.lane.b32.xlu0 %v3055_v44, %s2814_s15  ;;  %v1967_v44 = vld [vmem:[%s4010_s2 + $0x20] sm:$0xf] }
 0x102   : > { %v704_v40 = vpop.permute.xlu1 %703  ;;  %vm1972_vm5 = vcmp.gt.f32.partialorder %v1967_v44, 0.5  ;;  %v1590_v44 = vld [vmem:[#allocation2 + $0x111] sm:$0xff] }
 0x103   : > { %783 = vst.msk [vmem:[#allocation3 + $0x88] sm:$0xff] %vm765_vm4, %v704_v40  ;;  %v710_v41 = vpop.permute.xlu0 %709  ;;  %v1573_v40 = vld [vmem:[#allocation2 + $0x49] sm:$0xff] }
 0x104   : > { %1077 = vrot.lane.b32.xlu1 %v3061_v46, %s2814_s15  ;;  %786 = vst.msk [vmem:[#allocation3 + $0xa0] sm:$0xff] %vm765_vm4, %v710_v41 }
 0x105   : > { %1083 = vrot.lane.b32.xlu0 %v3072_v51, %s2814_s15 }
 0x106   : > { %v708_v42 = vpop.permute.xlu1 %707 }
 0x107   : > { %785 = vst.msk [vmem:[#allocation3 + $0x98] sm:$0xff] %vm765_vm4, %v708_v42  ;;  %v714_v43 = vpop.permute.xlu0 %713 }
 0x108   : > { %1081 = vrot.lane.b32.xlu1 %v3070_v50, %s2814_s15  ;;  %788 = vst.msk [vmem:[#allocation3 + $0xb0] sm:$0xff] %vm765_vm4, %v714_v43  ;;  %v1964_v50 = vld [vmem:[%s4010_s2 + $0x8] sm:$0xff] }
 0x109   : > { %1087 = vrot.lane.b32.xlu0 %v3089_v56, %s2814_s15  ;;  %v4038_v56 = vmov 0   ;;  %vm1969_vm6 = vcmp.gt.f32.partialorder %v1964_v50, 0.5  ;;  %v1574_v50 = vld [vmem:[#allocation2 + $0x51] sm:$0xff] }
 0x10a   : > { %v712_v46 = vpop.permute.xlu1 %711  ;;  %v1977_v62 = vsel %vm1972_vm5, 1, %v4038_v56  ;;  %v1975_v2 = vsel %vm1970_vm8, 1, %v4038_v56  ;;  %v1973_v28 = vsel %vm1968_vm10, 1, %v4038_v56  ;;  %vm1924_vm5 = vcmask 294144  }
 0x10b   : > { %787 = vst.msk [vmem:[#allocation3 + $0xa8] sm:$0xff] %vm765_vm4, %v712_v46  ;;  %v718_v51 = vpop.permute.xlu0 %717 }
 0x10c   : > { %1085 = vrot.lane.b32.xlu1 %v3117_v63, %s2814_s15  ;;  %790 = vst.msk [vmem:[#allocation3 + $0xc0] sm:$0xff] %vm765_vm4, %v718_v51  ;;  %v1966_v63 = vld [vmem:[%s4010_s2 + $0x18] sm:$0xff] }
 0x10d   : > { %1091 = vrot.lane.b32.xlu0 %v3165_v9, %s2814_s15  ;;  %vm1971_vm7 = vcmp.gt.f32.partialorder %v1966_v63, 0.5  ;;  %v1974_v9 = vsel %vm1969_vm6, 1, %v4038_v56  ;;  %vm2055_vm6 = vcmask 293888  }
 0x10e   : > { %v716_v47 = vpop.permute.xlu1 %715 }
 0x10f   : > { %789 = vst.msk [vmem:[#allocation3 + $0xb8] sm:$0xff] %vm765_vm4, %v716_v47  ;;  %v722_v59 = vpop.permute.xlu0 %721 }
 0x110   : > { %1089 = vrot.lane.b32.xlu1 %v3173_v12, %s2814_s15  ;;  %792 = vst.msk [vmem:[#allocation3 + $0xd0] sm:$0xff] %vm765_vm4, %v722_v59  ;;  %v1976_v12 = vsel %vm1971_vm7, 1, %v4038_v56  ;;  %v4043_v56 = vld [vmem:[#allocation11_spill] sm:$0xff] }
 0x111   : > { %1991 = vperm.xlu0 %2729, %v1977_v62   ;;  %v1767_v59 = vld [vmem:[#allocation2 + $0x52] sm:$0xff] }
 0x112   : > { %v720_v1 = vpop.permute.xlu1 %719 }
 0x113   : > { %791 = vst.msk [vmem:[#allocation3 + $0xc8] sm:$0xff] %vm765_vm4, %v720_v1  ;;  %v726_v3 = vpop.permute.xlu0 %725  ;;  %v4044_v1 = vld [vmem:[#allocation8_spill] sm:$0xff] }
 0x114   : > { %1093 = vrot.lane.b32.xlu1 %v3187_v16, %s2814_s15  ;;  %794 = vst.msk [vmem:[#allocation3 + $0xe0] sm:$0xff] %vm765_vm4, %v726_v3 }
 0x115   : > { %1982 = vperm.xlu0 %2729, %v1974_v9  }
 0x116   : > { %v724_v0 = vpop.permute.xlu1 %723 }
 0x117   : > { %793 = vst.msk [vmem:[#allocation3 + $0xd8] sm:$0xff] %vm765_vm4, %v724_v0  ;;  %v730_v5 = vpop.permute.xlu0 %729 }
 0x118   : > { %1988 = vperm.xlu1 %2730, %v1976_v12   ;;  %796 = vst.msk [vmem:[#allocation3 + $0xf0] sm:$0xff] %vm765_vm4, %v730_v5 }
 0x119   : > { %1280 = vrot.lane.b32.xlu0 %v3260_v33, %s2815_s9 }
 0x11a   : > { %v728_v24 = vpop.permute.xlu1 %727 }
 0x11b   : > { %795 = vst.msk [vmem:[#allocation3 + $0xe8] sm:$0xff] %vm765_vm4, %v728_v24  ;;  %v863_v16 = vpop.permute.xlu0 %862 }
 0x11c   : > { %1985 = vperm.xlu1 %2730, %v1975_v2   ;;  %959 = vst.msk [vmem:[#allocation3] sm:$0xff] %vm958_vm9, %v863_v16  ;;  %v4045_v2 = vld [vmem:[#allocation13_spill] sm:$0xff] }
 0x11d   : > { %1282 = vrot.lane.b32.xlu0 %v3268_v36, %s2815_s9 }
 0x11e   : > { %v732_v4 = vpop.permute.xlu1 %731 }
 0x11f   : > { %797 = vst.msk [vmem:[#allocation3 + $0xf8] sm:$0xff] %vm765_vm4, %v732_v4  ;;  %v867_v38 = vpop.permute.xlu0 %866  ;;  %v1575_v4 = vld [vmem:[#allocation2 + $0x61] sm:$0xff] }
 0x120   : > { %1248 = vrot.lane.b32.xlu1 %v3229_v49, %s2815_s9  ;;  %961 = vst.msk [vmem:[#allocation3 + $0x10] sm:$0xff] %vm958_vm9, %v867_v38 }
 0x121   : > { %1474 = vrot.lane.b32.xlu0 %v3153_v7, %s2816_s10  ;;  %v1571_v7 = vld [vmem:[#allocation2 + $0x31] sm:$0xff] }
 0x122   : > { %v865_v33 = vpop.permute.xlu1 %864 }
 0x123   : > { %960 = vst.msk [vmem:[#allocation3 + $0x8] sm:$0xff] %vm958_vm9, %v865_v33  ;;  %v871_v36 = vpop.permute.xlu0 %870 }
 0x124   : > { %1250 = vrot.lane.b32.xlu1 %v3237_v20, %s2815_s9  ;;  %963 = vst.msk [vmem:[#allocation3 + $0x20] sm:$0xff] %vm958_vm9, %v871_v36  ;;  %v1592_v36 = vld [vmem:[#allocation2 + $0x129] sm:$0xff] }
 0x125   : > { %1444 = vrot.lane.b32.xlu0 %v3077_v52, %s2816_s10 }
 0x126   : > { %v869_v49 = vpop.permute.xlu1 %868 }
 0x127   : > { %962 = vst.msk [vmem:[#allocation3 + $0x18] sm:$0xff] %vm958_vm9, %v869_v49  ;;  %v875_v45 = vpop.permute.xlu0 %874 }
 0x128   : > { %1442 = vrot.lane.b32.xlu1 %v3083_v53, %s2816_s10  ;;  %965 = vst.msk [vmem:[#allocation3 + $0x30] sm:$0xff] %vm958_vm9, %v875_v45 }
 0x129   : > { %1635 = vrot.lane.b32.xlu0 %v1571_v7, %s2817_s14 }
 0x12a   : > { %v873_v20 = vpop.permute.xlu1 %872 }
 0x12b   : > { %964 = vst.msk [vmem:[#allocation3 + $0x28] sm:$0xff] %vm958_vm9, %v873_v20  ;;  %v879_v52 = vpop.permute.xlu0 %878 }
 0x12c   : > { %1979 = vperm.xlu1 %2730, %v1973_v28   ;;  %967 = vst.msk [vmem:[#allocation3 + $0x40] sm:$0xff] %vm958_vm9, %v879_v52  ;;  %v1576_v28 = vld [vmem:[#allocation2 + $0x69] sm:$0xff] }
 0x12d   : > { %1637 = vrot.lane.b32.xlu0 %v1572_v34, %s2817_s14  ;;  %v1768_v34 = vld [vmem:[#allocation2 + $0x62] sm:$0xff] }
 0x12e   : > { %v877_v48 = vpop.permute.xlu1 %876 }
 0x12f   : > { %966 = vst.msk [vmem:[#allocation3 + $0x38] sm:$0xff] %vm958_vm9, %v877_v48  ;;  %v883_v53 = vpop.permute.xlu0 %882  ;;  %v1769_v48 = vld [vmem:[#allocation2 + $0x6a] sm:$0xff] }
 0x130   : > { %1476 = vrot.lane.b32.xlu1 %v3151_v6, %s2816_s10  ;;  %969 = vst.msk [vmem:[#allocation3 + $0x50] sm:$0xff] %vm958_vm9, %v883_v53 }
 0x131   : > { %1828 = vrot.lane.b32.xlu0 %v4039_v21, %s2818_s16 }
 0x132   : > { %v881_v22 = vpop.permute.xlu1 %880 }
 0x133   : > { %968 = vst.msk [vmem:[#allocation3 + $0x48] sm:$0xff] %vm958_vm9, %v881_v22  ;;  %v887_v35 = vpop.permute.xlu0 %886 }
 0x134   : > { %1667 = vrot.lane.b32.xlu1 %v1587_v13, %s2817_s14  ;;  %971 = vst.msk [vmem:[#allocation3 + $0x60] sm:$0xff] %vm958_vm9, %v887_v35  ;;  %v1785_v35 = vld [vmem:[#allocation2 + $0x12a] sm:$0xff] }
 0x135   : > { %1252 = vrot.lane.b32.xlu0 %v4039_v21, %s2815_s9  ;;  %v1384_v21 = vld [vmem:[#allocation2 + $0x78] sm:$0xff] }
 0x136   : > { %v885_v19 = vpop.permute.xlu1 %884 }
 0x137   : > { %970 = vst.msk [vmem:[#allocation3 + $0x58] sm:$0xff] %vm958_vm9, %v885_v19  ;;  %v891_v6 = vpop.permute.xlu0 %890  ;;  %v3626_v19 = vld [vmem:[%s1959_s25] ss:$0 sm:$0xff] }
 0x138   : > { %1669 = vrot.lane.b32.xlu1 %v1588_v29, %s2817_s14  ;;  %973 = vst.msk [vmem:[#allocation3 + $0x70] sm:$0xff] %vm958_vm9, %v891_v6  ;;  %v1385_v29 = vld [vmem:[#allocation2 + $0x80] sm:$0xff] }
 0x139   : > { %1830 = vrot.lane.b32.xlu0 %v4040_v23, %s2818_s16  ;;  %v3628_v6 = vld [vmem:[%s1961_s7] ss:$0 sm:$0xff] }
 0x13a   : > { %v889_v37 = vpop.permute.xlu1 %888 }
 0x13b   : > { %972 = vst.msk [vmem:[#allocation3 + $0x68] sm:$0xff] %vm958_vm9, %v889_v37  ;;  %v895_v60 = vpop.permute.xlu0 %894  ;;  %v2017_v37 = vld [vmem:[%s4011_s3 + $0x20] sm:$0xf] }
 0x13c   : > { %1860 = vrot.lane.b32.xlu1 %v4041_v25, %s2818_s16  ;;  %975 = vst.msk [vmem:[#allocation3 + $0x80] sm:$0xff] %vm958_vm9, %v895_v60 }
 0x13d   : > { %1254 = vrot.lane.b32.xlu0 %v4040_v23, %s2815_s9 }
 0x13e   : > { %v893_v26 = vpop.permute.xlu1 %892 }
 0x13f   : > { %974 = vst.msk [vmem:[#allocation3 + $0x78] sm:$0xff] %vm958_vm9, %v893_v26  ;;  %v899_v27 = vpop.permute.xlu0 %898 }
 0x140   : > { %1284 = vrot.lane.b32.xlu1 %v4041_v25, %s2815_s9  ;;  %977 = vst.msk [vmem:[#allocation3 + $0x90] sm:$0xff] %vm958_vm9, %v899_v27  ;;  %v1577_v27 = vld [vmem:[#allocation2 + $0x79] sm:$0xff] }
 0x141   : > { %1446 = vrot.lane.b32.xlu0 %v3087_v55, %s2816_s10 }
 0x142   : > { %v897_v30 = vpop.permute.xlu1 %896 }
 0x143   : > { %976 = vst.msk [vmem:[#allocation3 + $0x88] sm:$0xff] %vm958_vm9, %v897_v30  ;;  %v903_v32 = vpop.permute.xlu0 %902  ;;  %v2016_v30 = vld [vmem:[%s4011_s3 + $0x18] sm:$0xff] }
 0x144   : > { %1862 = vrot.lane.b32.xlu1 %v4042_v31, %s2818_s16  ;;  %979 = vst.msk [vmem:[#allocation3 + $0xa0] sm:$0xff] %vm958_vm9, %v903_v32 }
 0x145   : > { %1448 = vrot.lane.b32.xlu0 %v3085_v54, %s2816_s10  ;;  %v1589_v54 = vld [vmem:[#allocation2 + $0x109] sm:$0xff] }
 0x146   : > { %v901_v39 = vpop.permute.xlu1 %900 }
 0x147   : > { %978 = vst.msk [vmem:[#allocation3 + $0x98] sm:$0xff] %vm958_vm9, %v901_v39  ;;  %v907_v41 = vpop.permute.xlu0 %906 }
 0x148   : > { %1286 = vrot.lane.b32.xlu1 %v4042_v31, %s2815_s9  ;;  %981 = vst.msk [vmem:[#allocation3 + $0xb0] sm:$0xff] %vm958_vm9, %v907_v41  ;;  %v2015_v41 = vld [vmem:[%s4011_s3 + $0x10] sm:$0xff] }
 0x149   : > { %1639 = vrot.lane.b32.xlu0 %v1573_v40, %s2817_s14 }
 0x14a   : > { %v905_v55 = vpop.permute.xlu1 %904 }
 0x14b   : > { %980 = vst.msk [vmem:[#allocation3 + $0xa8] sm:$0xff] %vm958_vm9, %v905_v55  ;;  %v911_v42 = vpop.permute.xlu0 %910 }
 0x14c   : > { %1478 = vrot.lane.b32.xlu1 %v3169_v10, %s2816_s10  ;;  %983 = vst.msk [vmem:[#allocation3 + $0xc0] sm:$0xff] %vm958_vm9, %v911_v42 }
 0x14d   : > { %1095 = vrot.lane.b32.xlu0 %v1589_v54, %s2814_s15 }
 0x14e   : > { %v909_v43 = vpop.permute.xlu1 %908 }
 0x14f   : > { %982 = vst.msk [vmem:[#allocation3 + $0xb8] sm:$0xff] %vm958_vm9, %v909_v43  ;;  %v915_v46 = vpop.permute.xlu0 %914 }
 0x150   : > { %1480 = vrot.lane.b32.xlu1 %v3155_v8, %s2816_s10  ;;  %985 = vst.msk [vmem:[#allocation3 + $0xd0] sm:$0xff] %vm958_vm9, %v915_v46  ;;  %v1188_v8 = vld [vmem:[#allocation2 + $0x4a] sm:$0xff] }
 0x151   : > { %1673 = vrot.lane.b32.xlu0 %v1590_v44, %s2817_s14 }
 0x152   : > { %v913_v51 = vpop.permute.xlu1 %912 }
 0x153   : > { %984 = vst.msk [vmem:[#allocation3 + $0xc8] sm:$0xff] %vm958_vm9, %v913_v51  ;;  %v919_v10 = vpop.permute.xlu0 %918 }
 0x154   : > { %1671 = vrot.lane.b32.xlu1 %v1589_v54, %s2817_s14  ;;  %987 = vst.msk [vmem:[#allocation3 + $0xe0] sm:$0xff] %vm958_vm9, %v919_v10 }
 0x155   : > { %1864 = vrot.lane.b32.xlu0 %v4043_v56, %s2818_s16 }
 0x156   : > { %v917_v47 = vpop.permute.xlu1 %916 }
 0x157   : > { %986 = vst.msk [vmem:[#allocation3 + $0xd8] sm:$0xff] %vm958_vm9, %v917_v47  ;;  %v923_v62 = vpop.permute.xlu0 %922  ;;  %v1594_v47 = vld [vmem:[#allocation2 + $0x141] sm:$0xff] }
 0x158   : > { %1641 = vrot.lane.b32.xlu1 %v1574_v50, %s2817_s14  ;;  %989 = vst.msk [vmem:[#allocation3 + $0xf0] sm:$0xff] %vm958_vm9, %v923_v62  ;;  %v1786_v62 = vld [vmem:[#allocation2 + $0x13a] sm:$0xff] }
 0x159   : > { %1256 = vrot.lane.b32.xlu0 %v1188_v8, %s2815_s9  ;;  %v1578_v8 = vld [vmem:[#allocation2 + $0x81] sm:$0xff] }
 0x15a   : > { %v921_v63 = vpop.permute.xlu1 %920 }
 0x15b   : > { %988 = vst.msk [vmem:[#allocation3 + $0xe8] sm:$0xff] %vm958_vm9, %v921_v63  ;;  %v1056_v9 = vpop.permute.xlu0 %1055 }
 0x15c   : > { %1832 = vrot.lane.b32.xlu1 %v4044_v1, %s2818_s16  ;;  %1152 = vst.msk [vmem:[#allocation3] sm:$0xff] %vm1151_vm11, %v1056_v9  ;;  %v1770_v1 = vld [vmem:[#allocation2 + $0x7a] sm:$0xff] }
 0x15d   : > { %1834 = vrot.lane.b32.xlu0 %v1767_v59, %s2818_s16  ;;  %v2013_v9 = vld [vmem:[%s4011_s3] sm:$0xff] }
 0x15e   : > { %v925_v61 = vpop.permute.xlu1 %924 }
 0x15f   : > { %990 = vst.msk [vmem:[#allocation3 + $0xf8] sm:$0xff] %vm958_vm9, %v925_v61  ;;  %v1060_v3 = vpop.permute.xlu0 %1059 }
 0x160   : > { %1097 = vrot.lane.b32.xlu1 %v1590_v44, %s2814_s15  ;;  %1154 = vst.msk [vmem:[#allocation3 + $0x10] sm:$0xff] %vm1151_vm11, %v1060_v3  ;;  %v1593_v44 = vld [vmem:[#allocation2 + $0x139] sm:$0xff] }
 0x161   : > { %1258 = vrot.lane.b32.xlu0 %v1767_v59, %s2815_s9 }
 0x162   : > { %v1058_v12 = vpop.permute.xlu1 %1057 }
 0x163   : > { %1153 = vst.msk [vmem:[#allocation3 + $0x8] sm:$0xff] %vm1151_vm11, %v1058_v12  ;;  %v1064_v0 = vpop.permute.xlu0 %1063 }
 0x164   : > { %1288 = vrot.lane.b32.xlu1 %v4043_v56, %s2815_s9  ;;  %1156 = vst.msk [vmem:[#allocation3 + $0x20] sm:$0xff] %vm1151_vm11, %v1064_v0 }
 0x165   : > { %1450 = vrot.lane.b32.xlu0 %v3099_v58, %s2816_s10 }
 0x166   : > { %v1062_v5 = vpop.permute.xlu1 %1061 }
 0x167   : > { %1155 = vst.msk [vmem:[#allocation3 + $0x18] sm:$0xff] %vm1151_vm11, %v1062_v5  ;;  %v1068_v24 = vpop.permute.xlu0 %1067 }
 0x168   : > { %1866 = vrot.lane.b32.xlu1 %v4045_v2, %s2818_s16  ;;  %1158 = vst.msk [vmem:[#allocation3 + $0x30] sm:$0xff] %vm1151_vm11, %v1068_v24 }
 0x169   : > { %1452 = vrot.lane.b32.xlu0 %v3097_v57, %s2816_s10  ;;  %v1591_v57 = vld [vmem:[#allocation2 + $0x121] sm:$0xff] }
 0x16a   : > { %v1066_v16 = vpop.permute.xlu1 %1065 }
 0x16b   : > { %1157 = vst.msk [vmem:[#allocation3 + $0x28] sm:$0xff] %vm1151_vm11, %v1066_v16  ;;  %v1072_v38 = vpop.permute.xlu0 %1071 }
 0x16c   : > { %1290 = vrot.lane.b32.xlu1 %v4045_v2, %s2815_s9  ;;  %1160 = vst.msk [vmem:[#allocation3 + $0x40] sm:$0xff] %vm1151_vm11, %v1072_v38  ;;  %v1771_v2 = vld [vmem:[#allocation2 + $0x82] sm:$0xff] }
 0x16d   : > { %1643 = vrot.lane.b32.xlu0 %v1575_v4, %s2817_s14 }
 0x16e   : > { %v1070_v58 = vpop.permute.xlu1 %1069 }
 0x16f   : > { %1159 = vst.msk [vmem:[#allocation3 + $0x38] sm:$0xff] %vm1151_vm11, %v1070_v58  ;;  %v1076_v33 = vpop.permute.xlu0 %1075  ;;  %v1787_v58 = vld [vmem:[#allocation2 + $0x142] sm:$0xff] }
 0x170   : > { %1482 = vrot.lane.b32.xlu1 %v3183_v14, %s2816_s10  ;;  %1162 = vst.msk [vmem:[#allocation3 + $0x50] sm:$0xff] %vm1151_vm11, %v1076_v33  ;;  %v1784_v14 = vld [vmem:[#allocation2 + $0x122] sm:$0xff]  ;;  %v1386_v33 = vld [vmem:[#allocation2 + $0x90] sm:$0xff] }
 0x171   : > { %1099 = vrot.lane.b32.xlu0 %v1591_v57, %s2814_s15 }
 0x172   : > { %v1074_v17 = vpop.permute.xlu1 %1073 }
 0x173   : > { %1161 = vst.msk [vmem:[#allocation3 + $0x48] sm:$0xff] %vm1151_vm11, %v1074_v17  ;;  %v1080_v49 = vpop.permute.xlu0 %1079 }
 0x174   : > { %1484 = vrot.lane.b32.xlu1 %v3171_v11, %s2816_s10  ;;  %1164 = vst.msk [vmem:[#allocation3 + $0x60] sm:$0xff] %vm1151_vm11, %v1080_v49  ;;  %v1387_v49 = vld [vmem:[#allocation2 + $0x98] sm:$0xff] }
 0x175   : > { %1677 = vrot.lane.b32.xlu0 %v1592_v36, %s2817_s14 }
 0x176   : > { %v1078_v7 = vpop.permute.xlu1 %1077 }
 0x177   : > { %1163 = vst.msk [vmem:[#allocation3 + $0x58] sm:$0xff] %vm1151_vm11, %v1078_v7  ;;  %v1084_v45 = vpop.permute.xlu0 %1083 }
 0x178   : > { %1675 = vrot.lane.b32.xlu1 %v1591_v57, %s2817_s14  ;;  %1166 = vst.msk [vmem:[#allocation3 + $0x70] sm:$0xff] %vm1151_vm11, %v1084_v45  ;;  %v1402_v45 = vld [vmem:[#allocation2 + $0x150] sm:$0xff] }
 0x179   : > { %1868 = vrot.lane.b32.xlu0 %v1784_v14, %s2818_s16 }
 0x17a   : > { %v1082_v20 = vpop.permute.xlu1 %1081 }
 0x17b   : > { %1165 = vst.msk [vmem:[#allocation3 + $0x68] sm:$0xff] %vm1151_vm11, %v1082_v20  ;;  %v1088_v11 = vpop.permute.xlu0 %1087 }
 0x17c   : > { %1645 = vrot.lane.b32.xlu1 %v1576_v28, %s2817_s14  ;;  %1168 = vst.msk [vmem:[#allocation3 + $0x80] sm:$0xff] %vm1151_vm11, %v1088_v11  ;;  %v1579_v28 = vld [vmem:[#allocation2 + $0x91] sm:$0xff] }
 0x17d   : > { %1260 = vrot.lane.b32.xlu0 %v1768_v34, %s2815_s9 }
 0x17e   : > { %v1086_v52 = vpop.permute.xlu1 %1085 }
 0x17f   : > { %1167 = vst.msk [vmem:[#allocation3 + $0x78] sm:$0xff] %vm1151_vm11, %v1086_v52  ;;  %v1092_v53 = vpop.permute.xlu0 %1091 }
 0x180   : > { %1836 = vrot.lane.b32.xlu1 %v1768_v34, %s2818_s16  ;;  %1170 = vst.msk [vmem:[#allocation3 + $0x90] sm:$0xff] %vm1151_vm11, %v1092_v53 }
 0x181   : > { %1838 = vrot.lane.b32.xlu0 %v1769_v48, %s2818_s16 }
 0x182   : > { %v1090_v13 = vpop.permute.xlu1 %1089 }
 0x183   : > { %1169 = vst.msk [vmem:[#allocation3 + $0x88] sm:$0xff] %vm1151_vm11, %v1090_v13  ;;  %v1595_v13 = vld [vmem:[#allocation2 + $0x151] sm:$0xff] }
 0x184   : > { %1101 = vrot.lane.b32.xlu1 %v1592_v36, %s2814_s15 }
 0x185   : > { %1262 = vrot.lane.b32.xlu0 %v1769_v48, %s2815_s9  ;;  %v1403_v48 = vld [vmem:[#allocation2 + $0x158] sm:$0xff] }
 0x186   : > { %v1094_v22 = vpop.permute.xlu1 %1093 }
 0x187   : > { %1171 = vst.msk [vmem:[#allocation3 + $0x98] sm:$0xff] %vm1151_vm11, %v1094_v22 }
 0x188   : > { %1292 = vrot.lane.b32.xlu1 %v1784_v14, %s2815_s9 }
 0x189   : > { %1454 = vrot.lane.b32.xlu0 %v1384_v21, %s2816_s10  ;;  %v1596_v21 = vld [vmem:[#allocation2 + $0x159] sm:$0xff] }
 0x18c   : > { %1870 = vrot.lane.b32.xlu1 %v1785_v35, %s2818_s16  ;;  %v1992_v23 = vpop.permute.xlu0 %1991 }
 0x18d   : > { %vm1997_vm12 = vcmp.eq.s32.totalorder %v1992_v23, 1  ;;  %1456 = vrot.lane.b32.xlu0 %v1385_v29, %s2816_s10 }
 0x18e   : > { %v2010_v25 = vsel %vm1997_vm12, %v3628_v6, %v3626_v19 }
 0x18f   : > { %v2022_v60 = vmul.f32 %v2017_v37, %v2010_v25  ;;  %v1788_v37 = vld [vmem:[#allocation2 + $0x152] sm:$0xff] }
 0x190   : > { %1294 = vrot.lane.b32.xlu1 %v1785_v35, %s2815_s9  ;;  %v1983_v26 = vpop.permute.xlu0 %1982 }
 0x191   : > { %2595 = vmatprep.subr.msk.mxu0 %vm2152_vm13, %v2022_v60  ;;  %2653 = vmatprep.subr.msk.mxu1 %vm2152_vm13, %v2022_v60  ;;  %vm1994_vm0 = vcmp.eq.s32.totalorder %v1983_v26, 1 }
 0x192   : > { %2596 = vmatpush3.msk.msra.mxu0 %vm2152_vm13, %v2022_v60  ;;  %2658 = vmatpush3.msk.msra.mxu1 %vm2152_vm13, %v2022_v60  ;;  %v2007_v42 = vsel %vm1994_vm0, %v3628_v6, %v3626_v19  ;;  %v1772_v60 = vld [vmem:[#allocation2 + $0x92] sm:$0xff] }
 0x193   : > { %v1989_v31 = vpop.permute.xlu1 %1988  ;;  %1647 = vrot.lane.b32.xlu0 %v1577_v27, %s2817_s14 }
 0x194   : > { %vm1996_vm14 = vcmp.eq.s32.totalorder %v1989_v31, 1  ;;  %1486 = vrot.lane.b32.xlu1 %v3196_v18, %s2816_s10  ;;  %v1281_v39 = vpop.permute.xlu0 %1280  ;;  %v2014_v18 = vld [vmem:[%s4011_s3 + $0x8] sm:$0xff] }
 0x195   : > { %v2009_v32 = vsel %vm1996_vm14, %v3628_v6, %v3626_v19  ;;  %1361 = vst.msk [vmem:[#allocation3 + $0x80] sm:$0xff] %vm1344_vm15, %v1281_v39  ;;  %v2019_v10 = vmul.f32 %v2014_v18, %v2007_v42 }
 0x196   : > { %v2021_v40 = vmul.f32 %v2016_v30, %v2009_v32  ;;  %v1773_v30 = vld [vmem:[#allocation2 + $0x9a] sm:$0xff] }
 0x197   : > { %v1986_v55 = vpop.permute.xlu1 %1985  ;;  %1103 = vrot.lane.b32.xlu0 %v1593_v44, %s2814_s15 }
 0x198   : > { %vm1995_vm1 = vcmp.eq.s32.totalorder %v1986_v55, 1  ;;  %2597 = vmatprep.subr.mxu0 %v2021_v40  ;;  %2654 = vmatprep.subr.mxu1 %v2021_v40  ;;  %v1283_v43 = vpop.permute.xlu0 %1282  ;;  %v1388_v55 = vld [vmem:[#allocation2 + $0xa8] sm:$0xff] }
 0x199   : > { %v2008_v54 = vsel %vm1995_vm1, %v3628_v6, %v3626_v19  ;;  %2598 = vmatpush3.msra.mxu0 %v2021_v40  ;;  %2659 = vmatpush3.msra.mxu1 %v2021_v40  ;;  %1362 = vst.msk [vmem:[#allocation3 + $0x88] sm:$0xff] %vm1344_vm15, %v1283_v43  ;;  %v1389_v43 = vld [vmem:[#allocation2 + $0xb0] sm:$0xff] }
 0x19a   : > { %v2020_v46 = vmul.f32 %v2015_v41, %v2008_v54  ;;  %1488 = vrot.lane.b32.xlu1 %v3185_v15, %s2816_s10  ;;  %v1789_v41 = vld [vmem:[#allocation2 + $0x15a] sm:$0xff] }
 0x19b   : > { %v1249_v51 = vpop.permute.xlu1 %1248  ;;  %1681 = vrot.lane.b32.xlu0 %v1594_v47, %s2817_s14 }
 0x19c   : > { %1345 = vst.msk [vmem:[#allocation3] sm:$0xff] %vm1344_vm15, %v1249_v51  ;;  %2599 = vmatprep.subr.mxu0 %v2020_v46  ;;  %2655 = vmatprep.subr.mxu1 %v2020_v46  ;;  %v1475_v50 = vpop.permute.xlu0 %1474 }
 0x19d   : > { %2600 = vmatpush3.msra.mxu0 %v2020_v46  ;;  %2660 = vmatpush3.msra.mxu1 %v2020_v46  ;;  %1555 = vst.msk [vmem:[#allocation3 + $0x80] sm:$0xff] %vm1538_vm2, %v1475_v50  ;;  %v1581_v50 = vld [vmem:[#allocation2 + $0xa9] sm:$0xff] }
 0x19e   : > { %2601 = vmatprep.subr.mxu0 %v2019_v10  ;;  %2656 = vmatprep.subr.mxu1 %v2019_v10 }
 0x19f   : > { %2602 = vmatpush3.msra.mxu0 %v2019_v10  ;;  %2661 = vmatpush3.msra.mxu1 %v2019_v10  ;;  %v1251_v15 = vpop.permute.xlu1 %1250  ;;  %v1404_v10 = vld [vmem:[#allocation2 + $0x168] sm:$0xff] }
 0x1a0   : > { %1346 = vst.msk [vmem:[#allocation3 + $0x8] sm:$0xff] %vm1344_vm15, %v1251_v15  ;;  %1679 = vrot.lane.b32.xlu1 %v1593_v44, %s2817_s14  ;;  %v1445_v56 = vpop.permute.xlu0 %1444  ;;  %1872 = vrot.lane.b32.xlu0 %v1786_v62, %s2818_s16 }
 0x1a1   : > { %1540 = vst.msk [vmem:[#allocation3 + $0x8] sm:$0xff] %vm1538_vm2, %v1445_v56 }
 0x1a3   : > { %v1443_v63 = vpop.permute.xlu1 %1442 }
 0x1a4   : > { %1539 = vst.msk [vmem:[#allocation3] sm:$0xff] %vm1538_vm2, %v1443_v63  ;;  %1649 = vrot.lane.b32.xlu1 %v1578_v8, %s2817_s14  ;;  %v1636_v59 = vpop.permute.xlu0 %1635  ;;  %1264 = vrot.lane.b32.xlu0 %v1770_v1, %s2815_s9  ;;  %v1405_v8 = vld [vmem:[#allocation2 + $0x170] sm:$0xff] }
 0x1a5   : > { %1732 = vst.msk [vmem:[#allocation3] sm:$0xff] %vm1731_vm3, %v1636_v59  ;;  %v1597_v63 = vld [vmem:[#allocation2 + $0x169] sm:$0xff] }
 0x1a7   : > { %v1980_v61 = vpop.permute.xlu1 %1979 }
 0x1a8   : > { %vm1993_vm4 = vcmp.eq.s32.totalorder %v1980_v61, 1  ;;  %1840 = vrot.lane.b32.xlu1 %v1770_v1, %s2818_s16  ;;  %v1638_v12 = vpop.permute.xlu0 %1637  ;;  %1842 = vrot.lane.b32.xlu0 %v1771_v2, %s2818_s16  ;;  %v1598_v1 = vld [vmem:[#allocation2 + $0x171] sm:$0xff] }
 0x1a9   : > { %v2006_v3 = vsel %vm1993_vm4, %v3628_v6, %v3626_v19  ;;  %1733 = vst.msk [vmem:[#allocation3 + $0x8] sm:$0xff] %vm1731_vm3, %v1638_v12  ;;  %v1580_v6 = vld [vmem:[#allocation2 + $0x99] sm:$0xff]  ;;  %v1582_v12 = vld [vmem:[#allocation2 + $0xb1] sm:$0xff] }
 0x1aa   : > { %v2018_v0 = vmul.f32 %v2013_v9, %v2006_v3 }
 0x1ab   : > { %v1477_v5 = vpop.permute.xlu1 %1476 }
 0x1ac   : > { %1556 = vst.msk [vmem:[#allocation3 + $0x88] sm:$0xff] %vm1538_vm2, %v1477_v5  ;;  %2603 = vmatprep.subr.mxu0 %v2018_v0  ;;  %2657 = vmatprep.subr.mxu1 %v2018_v0  ;;  %v1829_v24 = vpop.permute.xlu0 %1828 }
 0x1ad   : > { %2604 = vmatpush3.msra.mxu0 %v2018_v0  ;;  %2662 = vmatpush3.msra.mxu1 %v2018_v0  ;;  %1925 = vst.msk [vmem:[#allocation3] sm:$0xff] %vm1924_vm5, %v1829_v24  ;;  %v1790_v0 = vld [vmem:[#allocation2 + $0x16a] sm:$0xff] }
 0x1ae   : > { %1105 = vrot.lane.b32.xlu1 %v1594_v47, %s2814_s15  ;;  %1266 = vrot.lane.b32.xlu0 %v1771_v2, %s2815_s9  ;;  %v1774_v24 = vld [vmem:[#allocation2 + $0xaa] sm:$0xff] }
 0x1af   : > { %v1668_v16 = vpop.permute.xlu1 %1667 }
 0x1b0   : > { %1748 = vst.msk [vmem:[#allocation3 + $0x80] sm:$0xff] %vm1731_vm3, %v1668_v16  ;;  %v1253_v4 = vpop.permute.xlu0 %1252 }
 0x1b1   : > { %1347 = vst.msk [vmem:[#allocation3 + $0x10] sm:$0xff] %vm1344_vm15, %v1253_v4 }
 0x1b2   : > { %1296 = vrot.lane.b32.xlu1 %v1786_v62, %s2815_s9  ;;  %1458 = vrot.lane.b32.xlu0 %v1386_v33, %s2816_s10 }
 0x1b3   : > { %v1670_v38 = vpop.permute.xlu1 %1669 }
 0x1b4   : > { %1749 = vst.msk [vmem:[#allocation3 + $0x88] sm:$0xff] %vm1731_vm3, %v1670_v38  ;;  %v1831_v57 = vpop.permute.xlu0 %1830  ;;  %v2023_v17 = vld [vmem:[#allocation3] sm:$0xff] }
 0x1b5   : > { %1926 = vst.msk [vmem:[#allocation3 + $0x8] sm:$0xff] %vm1924_vm5, %v1831_v57  ;;  %2605 = vmatprep.mubr.msk.f32.mxu0 %vm2055_vm6, %v2023_v17  ;;  %v1775_v38 = vld [vmem:[#allocation2 + $0xb2] sm:$0xff] }
 0x1b6   : > { %1874 = vrot.lane.b32.xlu1 %v1787_v58, %s2818_s16  ;;  %1460 = vrot.lane.b32.xlu0 %v1387_v49, %s2816_s10  ;;  %v1390_v49 = vld [vmem:[#allocation2 + $0xc0] sm:$0xff] }
 0x1b7   : > { %v1861_v36 = vpop.permute.xlu1 %1860 }
 0x1b8   : > { %1941 = vst.msk [vmem:[#allocation3 + $0x80] sm:$0xff] %vm1924_vm5, %v1861_v36  ;;  %v1255_v7 = vpop.permute.xlu0 %1254  ;;  %v1791_v36 = vld [vmem:[#allocation2 + $0x172] sm:$0xff] }
 0x1b9   : > { %1348 = vst.msk [vmem:[#allocation3 + $0x18] sm:$0xff] %vm1344_vm15, %v1255_v7 }
 0x1ba   : > { %1298 = vrot.lane.b32.xlu1 %v1787_v58, %s2815_s9  ;;  %1651 = vrot.lane.b32.xlu0 %v1579_v28, %s2817_s14  ;;  %v1391_v28 = vld [vmem:[#allocation2 + $0xc8] sm:$0xff] }
 0x1bb   : > { %v1285_v14 = vpop.permute.xlu1 %1284 }
 0x1bc   : > { %1363 = vst.msk [vmem:[#allocation3 + $0x90] sm:$0xff] %vm1344_vm15, %v1285_v14  ;;  %v1447_v20 = vpop.permute.xlu0 %1446  ;;  %v2024_v11 = vld [vmem:[#allocation3 + $0x8] sm:$0xff] }
 0x1bd   : > { %1541 = vst.msk [vmem:[#allocation3 + $0x10] sm:$0xff] %vm1538_vm2, %v1447_v20  ;;  %2606 = vmatmul.mubr.msk.f32.vlgmr.msra.gmra.mxu0 %vm2055_vm6, %v2024_v11 }
 0x1be   : > { %1490 = vrot.lane.b32.xlu1 %v1402_v45, %s2816_s10  ;;  %1107 = vrot.lane.b32.xlu0 %v1595_v13, %s2814_s15 }
 0x1bf   : > { %v1863_v34 = vpop.permute.xlu1 %1862  ;;  %v2039_v52 = vld [vmem:[#allocation3 + $0x80] sm:$0xff] }
 0x1c0   : > { %1942 = vst.msk [vmem:[#allocation3 + $0x88] sm:$0xff] %vm1924_vm5, %v1863_v34  ;;  %2629 = vmatprep.mubr.msk.f32.mxu1 %vm2055_vm6, %v2039_v52  ;;  %v1449_v53 = vpop.permute.xlu0 %1448  ;;  %v1406_v52 = vld [vmem:[#allocation2 + $0x180] sm:$0xff] }
 0x1c1   : > { %1542 = vst.msk [vmem:[#allocation3 + $0x18] sm:$0xff] %vm1538_vm2, %v1449_v53 }
 0x1c2   : > { %1492 = vrot.lane.b32.xlu1 %v1403_v48, %s2816_s10  ;;  %1685 = vrot.lane.b32.xlu0 %v1596_v21, %s2817_s14  ;;  %v1583_v48 = vld [vmem:[#allocation2 + $0xc1] sm:$0xff] }
 0x1c3   : > { %v1287_v22 = vpop.permute.xlu1 %1286 }
 0x1c4   : > { %1364 = vst.msk [vmem:[#allocation3 + $0x98] sm:$0xff] %vm1344_vm15, %v1287_v22  ;;  %v1640_v35 = vpop.permute.xlu0 %1639 }
 0x1c5   : > { %1734 = vst.msk [vmem:[#allocation3 + $0x10] sm:$0xff] %vm1731_vm3, %v1640_v35 }
 0x1c6   : > { %1683 = vrot.lane.b32.xlu1 %v1595_v13, %s2817_s14  ;;  %1876 = vrot.lane.b32.xlu0 %v1788_v37, %s2818_s16 }
 0x1c7   : > { %v1479_v29 = vpop.permute.xlu1 %1478  ;;  %v2040_v19 = vld [vmem:[#allocation3 + $0x88] sm:$0xff] }
 0x1c8   : > { %1557 = vst.msk [vmem:[#allocation3 + $0x90] sm:$0xff] %vm1538_vm2, %v1479_v29  ;;  %2630 = vmatmul.mubr.msk.f32.vlgmr.msra.gmra.mxu1 %vm2055_vm6, %v2040_v19  ;;  %v1096_v23 = vpop.permute.xlu0 %1095  ;;  %v1599_v29 = vld [vmem:[#allocation2 + $0x181] sm:$0xff] }
 0x1c9   : > { %1172 = vst.msk [vmem:[#allocation3 + $0xa0] sm:$0xff] %vm1151_vm11, %v1096_v23 }
 0x1ca   : > { %1653 = vrot.lane.b32.xlu1 %v1580_v6, %s2817_s14  ;;  %1268 = vrot.lane.b32.xlu0 %v1772_v60, %s2815_s9  ;;  %v1600_v6 = vld [vmem:[#allocation2 + $0x189] sm:$0xff] }
 0x1cb   : > { %v1481_v25 = vpop.permute.xlu1 %1480 }
 0x1cc   : > { %1558 = vst.msk [vmem:[#allocation3 + $0x98] sm:$0xff] %vm1538_vm2, %v1481_v25  ;;  %v1674_v26 = vpop.permute.xlu0 %1673 }
 0x1cd   : > { %1751 = vst.msk [vmem:[#allocation3 + $0x98] sm:$0xff] %vm1731_vm3, %v1674_v26  ;;  %v1792_v26 = vld [vmem:[#allocation2 + $0x182] sm:$0xff] }
 0x1ce   : > { %1844 = vrot.lane.b32.xlu1 %v1772_v60, %s2818_s16  ;;  %1846 = vrot.lane.b32.xlu0 %v1773_v30, %s2818_s16  ;;  %v1584_v60 = vld [vmem:[#allocation2 + $0xc9] sm:$0xff] }
 0x1cf   : > { %v1672_v27 = vpop.permute.xlu1 %1671 }
 0x1d0   : > { %1750 = vst.msk [vmem:[#allocation3 + $0x90] sm:$0xff] %vm1731_vm3, %v1672_v27  ;;  %v1865_v31 = vpop.permute.xlu0 %1864 }
 0x1d1   : > { %1943 = vst.msk [vmem:[#allocation3 + $0x90] sm:$0xff] %vm1924_vm5, %v1865_v31  ;;  %v1776_v31 = vld [vmem:[#allocation2 + $0xc2] sm:$0xff] }
 0x1d2   : > { %1109 = vrot.lane.b32.xlu1 %v1596_v21, %s2814_s15  ;;  %1270 = vrot.lane.b32.xlu0 %v1773_v30, %s2815_s9  ;;  %v1407_v21 = vld [vmem:[#allocation2 + $0x188] sm:$0xff] }
 0x1d3   : > { %v1642_v32 = vpop.permute.xlu1 %1641 }
 0x1d4   : > { %1735 = vst.msk [vmem:[#allocation3 + $0x18] sm:$0xff] %vm1731_vm3, %v1642_v32  ;;  %v1257_v39 = vpop.permute.xlu0 %1256 }
 0x1d5   : > { %1349 = vst.msk [vmem:[#allocation3 + $0x20] sm:$0xff] %vm1344_vm15, %v1257_v39 }
 0x1d6   : > { %1300 = vrot.lane.b32.xlu1 %v1788_v37, %s2815_s9  ;;  %1462 = vrot.lane.b32.xlu0 %v1388_v55, %s2816_s10 }
 0x1d7   : > { %v1833_v40 = vpop.permute.xlu1 %1832 }
 0x1d8   : > { %1927 = vst.msk [vmem:[#allocation3 + $0x10] sm:$0xff] %vm1924_vm5, %v1833_v40  ;;  %v1835_v18 = vpop.permute.xlu0 %1834  ;;  %v2041_v42 = vld [vmem:[#allocation3 + $0x90] sm:$0xff]  ;;  %v1777_v40 = vld [vmem:[#allocation2 + $0xca] sm:$0xff] }
 0x1d9   : > { %1928 = vst.msk [vmem:[#allocation3 + $0x18] sm:$0xff] %vm1924_vm5, %v1835_v18  ;;  %2632 = vmatprep.mubr.msk.f32.mxu1 %vm2055_vm6, %v2041_v42 }
 0x1da   : > { %1878 = vrot.lane.b32.xlu1 %v1789_v41, %s2818_s16  ;;  %1464 = vrot.lane.b32.xlu0 %v1389_v43, %s2816_s10  ;;  %v1392_v43 = vld [vmem:[#allocation2 + $0xd8] sm:$0xff] }
 0x1db   : > { %v1098_v54 = vpop.permute.xlu1 %1097 }
 0x1dc   : > { %1173 = vst.msk [vmem:[#allocation3 + $0xa8] sm:$0xff] %vm1151_vm11, %v1098_v54  ;;  %v1259_v44 = vpop.permute.xlu0 %1258  ;;  %v1793_v54 = vld [vmem:[#allocation2 + $0x18a] sm:$0xff] }
 0x1dd   : > { %1350 = vst.msk [vmem:[#allocation3 + $0x28] sm:$0xff] %vm1344_vm15, %v1259_v44 }
 0x1de   : > { %1302 = vrot.lane.b32.xlu1 %v1789_v41, %s2815_s9  ;;  %1655 = vrot.lane.b32.xlu0 %v1581_v50, %s2817_s14 }
 0x1df   : > { %v1289_v46 = vpop.permute.xlu1 %1288  ;;  %v2025_v51 = vld [vmem:[#allocation3 + $0x10] sm:$0xff] }
 0x1e0   : > { %1365 = vst.msk [vmem:[#allocation3 + $0xa0] sm:$0xff] %vm1344_vm15, %v1289_v46  ;;  %2608 = vmatprep.mubr.msk.f32.mxu0 %vm2055_vm6, %v2025_v51  ;;  %v1451_v47 = vpop.permute.xlu0 %1450  ;;  %v2026_v15 = vld [vmem:[#allocation3 + $0x18] sm:$0xff] }
 0x1e1   : > { %1543 = vst.msk [vmem:[#allocation3 + $0x20] sm:$0xff] %vm1538_vm2, %v1451_v47  ;;  %2609 = vmatmul.mubr.msk.f32.gmra.mxu0 %vm2055_vm6, %v2026_v15 }
 0x1e2   : > { %1494 = vrot.lane.b32.xlu1 %v1404_v10, %s2816_s10  ;;  %1111 = vrot.lane.b32.xlu0 %v1597_v63, %s2814_s15  ;;  %v1393_v10 = vld [vmem:[#allocation2 + $0xe0] sm:$0xff] }
 0x1e3   : > { %v1867_v56 = vpop.permute.xlu1 %1866 }
 0x1e4   : > { %1944 = vst.msk [vmem:[#allocation3 + $0x98] sm:$0xff] %vm1924_vm5, %v1867_v56  ;;  %v1453_v62 = vpop.permute.xlu0 %1452  ;;  %v1408_v56 = vld [vmem:[#allocation2 + $0x198] sm:$0xff] }
 0x1e5   : > { %1544 = vst.msk [vmem:[#allocation3 + $0x28] sm:$0xff] %vm1538_vm2, %v1453_v62 }
 0x1e6   : > { %1496 = vrot.lane.b32.xlu1 %v1405_v8, %s2816_s10  ;;  %1689 = vrot.lane.b32.xlu0 %v1598_v1, %s2817_s14  ;;  %v1585_v8 = vld [vmem:[#allocation2 + $0xd9] sm:$0xff] }
 0x1e7   : > { %v1291_v59 = vpop.permute.xlu1 %1290 }
 0x1e8   : > { %1366 = vst.msk [vmem:[#allocation3 + $0xa8] sm:$0xff] %vm1344_vm15, %v1291_v59  ;;  %v1644_v9 = vpop.permute.xlu0 %1643 }
 0x1e9   : > { %1736 = vst.msk [vmem:[#allocation3 + $0x20] sm:$0xff] %vm1731_vm3, %v1644_v9  ;;  %v1586_v9 = vld [vmem:[#allocation2 + $0xe1] sm:$0xff] }
 0x1ea   : > { %1687 = vrot.lane.b32.xlu1 %v1597_v63, %s2817_s14  ;;  %1880 = vrot.lane.b32.xlu0 %v1790_v0, %s2818_s16 }
 0x1eb   : > { %v1483_v61 = vpop.permute.xlu1 %1482  ;;  %v2042_v3 = vld [vmem:[#allocation3 + $0x98] sm:$0xff] }
 0x1ec   : > { %1559 = vst.msk [vmem:[#allocation3 + $0xa0] sm:$0xff] %vm1538_vm2, %v1483_v61  ;;  %2633 = vmatmul.mubr.msk.f32.gmra.mxu1 %vm2055_vm6, %v2042_v3  ;;  %v1100_v5 = vpop.permute.xlu0 %1099 }
 0x1ed   : > { %1174 = vst.msk [vmem:[#allocation3 + $0xb0] sm:$0xff] %vm1151_vm11, %v1100_v5 }
 0x1ee   : > { %1657 = vrot.lane.b32.xlu1 %v1582_v12, %s2817_s14  ;;  %1272 = vrot.lane.b32.xlu0 %v1774_v24, %s2815_s9  ;;  %v1601_v12 = vld [vmem:[#allocation2 + $0x199] sm:$0xff] }
 0x1ef   : > { %v1485_v2 = vpop.permute.xlu1 %1484 }
 0x1f0   : > { %1560 = vst.msk [vmem:[#allocation3 + $0xa8] sm:$0xff] %vm1538_vm2, %v1485_v2  ;;  %v1678_v16 = vpop.permute.xlu0 %1677 }
 0x1f1   : > { %1753 = vst.msk [vmem:[#allocation3 + $0xa8] sm:$0xff] %vm1731_vm3, %v1678_v16  ;;  %v1602_v16 = vld [vmem:[#allocation2 + $0x1a1] sm:$0xff] }
 0x1f2   : > { %1848 = vrot.lane.b32.xlu1 %v1774_v24, %s2818_s16  ;;  %1850 = vrot.lane.b32.xlu0 %v1775_v38, %s2818_s16 }
 0x1f3   : > { %v1676_v4 = vpop.permute.xlu1 %1675 }
 0x1f4   : > { %1752 = vst.msk [vmem:[#allocation3 + $0xa0] sm:$0xff] %vm1731_vm3, %v1676_v4  ;;  %v1869_v58 = vpop.permute.xlu0 %1868  ;;  %v1779_v4 = vld [vmem:[#allocation2 + $0xe2] sm:$0xff] }
 0x1f5   : > { %1945 = vst.msk [vmem:[#allocation3 + $0xa0] sm:$0xff] %vm1924_vm5, %v1869_v58 }
 0x1f6   : > { %1113 = vrot.lane.b32.xlu1 %v1598_v1, %s2814_s15  ;;  %1274 = vrot.lane.b32.xlu0 %v1775_v38, %s2815_s9  ;;  %v1409_v1 = vld [vmem:[#allocation2 + $0x1a0] sm:$0xff] }
 0x1f7   : > { %v1646_v33 = vpop.permute.xlu1 %1645 }
 0x1f8   : > { %1737 = vst.msk [vmem:[#allocation3 + $0x28] sm:$0xff] %vm1731_vm3, %v1646_v33  ;;  %v1261_v57 = vpop.permute.xlu0 %1260  ;;  %v1794_v33 = vld [vmem:[#allocation2 + $0x19a] sm:$0xff] }
 0x1f9   : > { %1351 = vst.msk [vmem:[#allocation3 + $0x30] sm:$0xff] %vm1344_vm15, %v1261_v57 }
 0x1fa   : > { %1304 = vrot.lane.b32.xlu1 %v1790_v0, %s2815_s9  ;;  %1466 = vrot.lane.b32.xlu0 %v1390_v49, %s2816_s10  ;;  %v1778_v0 = vld [vmem:[#allocation2 + $0xda] sm:$0xff] }
 0x1fb   : > { %v1837_v17 = vpop.permute.xlu1 %1836 }
 0x1fc   : > { %1929 = vst.msk [vmem:[#allocation3 + $0x20] sm:$0xff] %vm1924_vm5, %v1837_v17  ;;  %v1839_v7 = vpop.permute.xlu0 %1838  ;;  %v2043_v14 = vld [vmem:[#allocation3 + $0xa0] sm:$0xff] }
 0x1fd   : > { %1930 = vst.msk [vmem:[#allocation3 + $0x28] sm:$0xff] %vm1924_vm5, %v1839_v7  ;;  %2635 = vmatprep.mubr.msk.f32.mxu1 %vm2055_vm6, %v2043_v14 }
 0x1fe   : > { %1882 = vrot.lane.b32.xlu1 %v1791_v36, %s2818_s16  ;;  %1468 = vrot.lane.b32.xlu0 %v1391_v28, %s2816_s10 }
 0x1ff   : > { %v1102_v45 = vpop.permute.xlu1 %1101 }
 0x200   : > { %1175 = vst.msk [vmem:[#allocation3 + $0xb8] sm:$0xff] %vm1151_vm11, %v1102_v45  ;;  %v1263_v20 = vpop.permute.xlu0 %1262 }
 0x201   : > { %1352 = vst.msk [vmem:[#allocation3 + $0x38] sm:$0xff] %vm1344_vm15, %v1263_v20 }
 0x202   : > { %1306 = vrot.lane.b32.xlu1 %v1791_v36, %s2815_s9  ;;  %1659 = vrot.lane.b32.xlu0 %v1583_v48, %s2817_s14  ;;  %v1795_v36 = vld [vmem:[#allocation2 + $0x1a2] sm:$0xff] }
 0x203   : > { %v1293_v11 = vpop.permute.xlu1 %1292  ;;  %v2027_v34 = vld [vmem:[#allocation3 + $0x20] sm:$0xff] }
 0x204   : > { %1367 = vst.msk [vmem:[#allocation3 + $0xb0] sm:$0xff] %vm1344_vm15, %v1293_v11  ;;  %2611 = vmatprep.mubr.msk.f32.mxu0 %vm2055_vm6, %v2027_v34  ;;  %v1455_v53 = vpop.permute.xlu0 %1454  ;;  %v2028_v13 = vld [vmem:[#allocation3 + $0x28] sm:$0xff] }
 0x205   : > { %1545 = vst.msk [vmem:[#allocation3 + $0x30] sm:$0xff] %vm1538_vm2, %v1455_v53  ;;  %2612 = vmatmul.mubr.msk.f32.gmra.mxu0 %vm2055_vm6, %v2028_v13 }
 0x206   : > { %1498 = vrot.lane.b32.xlu1 %v1406_v52, %s2816_s10  ;;  %1115 = vrot.lane.b32.xlu0 %v1599_v29, %s2814_s15 }
 0x207   : > { %v1871_v22 = vpop.permute.xlu1 %1870 }
 0x208   : > { %1946 = vst.msk [vmem:[#allocation3 + $0xa8] sm:$0xff] %vm1924_vm5, %v1871_v22  ;;  %v1457_v35 = vpop.permute.xlu0 %1456 }
 0x209   : > { %1546 = vst.msk [vmem:[#allocation3 + $0x38] sm:$0xff] %vm1538_vm2, %v1457_v35 }
 0x20a   : > { %1500 = vrot.lane.b32.xlu1 %v1407_v21, %s2816_s10  ;;  %1693 = vrot.lane.b32.xlu0 %v1600_v6, %s2817_s14 }
 0x20b   : > { %v1295_v19 = vpop.permute.xlu1 %1294 }
 0x20c   : > { %1368 = vst.msk [vmem:[#allocation3 + $0xb8] sm:$0xff] %vm1344_vm15, %v1295_v19  ;;  %v1648_v37 = vpop.permute.xlu0 %1647 }
 0x20d   : > { %1738 = vst.msk [vmem:[#allocation3 + $0x30] sm:$0xff] %vm1731_vm3, %v1648_v37 }
 0x20e   : > { %1691 = vrot.lane.b32.xlu1 %v1599_v29, %s2817_s14  ;;  %1884 = vrot.lane.b32.xlu0 %v1792_v26, %s2818_s16 }
 0x20f   : > { %v1487_v23 = vpop.permute.xlu1 %1486  ;;  %v2044_v25 = vld [vmem:[#allocation3 + $0xa8] sm:$0xff] }
 0x210   : > { %1561 = vst.msk [vmem:[#allocation3 + $0xb0] sm:$0xff] %vm1538_vm2, %v1487_v23  ;;  %2636 = vmatmul.mubr.msk.f32.gmra.mxu1 %vm2055_vm6, %v2044_v25  ;;  %v1104_v27 = vpop.permute.xlu0 %1103 }
 0x211   : > { %1176 = vst.msk [vmem:[#allocation3 + $0xc0] sm:$0xff] %vm1151_vm11, %v1104_v27 }
 0x212   : > { %1661 = vrot.lane.b32.xlu1 %v1584_v60, %s2817_s14  ;;  %1276 = vrot.lane.b32.xlu0 %v1776_v31, %s2815_s9 }
 0x213   : > { %v1489_v30 = vpop.permute.xlu1 %1488 }
 0x214   : > { %1562 = vst.msk [vmem:[#allocation3 + $0xb8] sm:$0xff] %vm1538_vm2, %v1489_v30  ;;  %v1682_v32 = vpop.permute.xlu0 %1681 }
 0x215   : > { %1755 = vst.msk [vmem:[#allocation3 + $0xb8] sm:$0xff] %vm1731_vm3, %v1682_v32 }
 0x216   : > { %1852 = vrot.lane.b32.xlu1 %v1776_v31, %s2818_s16  ;;  %1854 = vrot.lane.b32.xlu0 %v1777_v40, %s2818_s16 }
 0x217   : > { %v1680_v39 = vpop.permute.xlu1 %1679 }
 0x218   : > { %1754 = vst.msk [vmem:[#allocation3 + $0xb0] sm:$0xff] %vm1731_vm3, %v1680_v39  ;;  %v1873_v41 = vpop.permute.xlu0 %1872 }
 0x219   : > { %1947 = vst.msk [vmem:[#allocation3 + $0xb0] sm:$0xff] %vm1924_vm5, %v1873_v41 }
 0x21a   : > { %1117 = vrot.lane.b32.xlu1 %v1600_v6, %s2814_s15  ;;  %1278 = vrot.lane.b32.xlu0 %v1777_v40, %s2815_s9  ;;  %s229_s15 = sand.u32 1, %s2791_s19  }
 0x21b   : > { %v1650_v55 = vpop.permute.xlu1 %1649  ;;  %s3962_s24 = scalar_lea.sflag [#allocation5], %s229_s15 }
 0x21c   : > { %1739 = vst.msk [vmem:[#allocation3 + $0x38] sm:$0xff] %vm1731_vm3, %v1650_v55  ;;  %v1265_v18 = vpop.permute.xlu0 %1264 }
 0x21d   : > { %1353 = vst.msk [vmem:[#allocation3 + $0x40] sm:$0xff] %vm1344_vm15, %v1265_v18 }
 0x21e   : > { %1308 = vrot.lane.b32.xlu1 %v1792_v26, %s2815_s9  ;;  %1470 = vrot.lane.b32.xlu0 %v1392_v43, %s2816_s10 }
 0x21f   : > { %v1841_v42 = vpop.permute.xlu1 %1840 }
 0x220   : > { %1931 = vst.msk [vmem:[#allocation3 + $0x30] sm:$0xff] %vm1924_vm5, %v1841_v42  ;;  %v1843_v44 = vpop.permute.xlu0 %1842  ;;  %v2045_v46 = vld [vmem:[#allocation3 + $0xb0] sm:$0xff] }
 0x221   : > { %1932 = vst.msk [vmem:[#allocation3 + $0x38] sm:$0xff] %vm1924_vm5, %v1843_v44  ;;  %2638 = vmatprep.mubr.msk.f32.mxu1 %vm2055_vm6, %v2045_v46 }
 0x222   : > { %1886 = vrot.lane.b32.xlu1 %v1793_v54, %s2818_s16  ;;  %1472 = vrot.lane.b32.xlu0 %v1393_v10, %s2816_s10 }
 0x223   : > { %v1106_v51 = vpop.permute.xlu1 %1105 }
 0x224   : > { %1177 = vst.msk [vmem:[#allocation3 + $0xc8] sm:$0xff] %vm1151_vm11, %v1106_v51  ;;  %v1267_v50 = vpop.permute.xlu0 %1266 }
 0x225   : > { %1354 = vst.msk [vmem:[#allocation3 + $0x48] sm:$0xff] %vm1344_vm15, %v1267_v50 }
 0x226   : > { %1310 = vrot.lane.b32.xlu1 %v1793_v54, %s2815_s9  ;;  %1663 = vrot.lane.b32.xlu0 %v1585_v8, %s2817_s14  ;;  %s2513_s9 = sshll.u32 %s229_s15, 8 }
 0x227   : > { %v1297_v47 = vpop.permute.xlu1 %1296  ;;  %v2029_v15 = vld [vmem:[#allocation3 + $0x30] sm:$0xff] }
 0x228   : > { %1369 = vst.msk [vmem:[#allocation3 + $0xc0] sm:$0xff] %vm1344_vm15, %v1297_v47  ;;  %2614 = vmatprep.mubr.msk.f32.mxu0 %vm2055_vm6, %v2029_v15  ;;  %v1459_v62 = vpop.permute.xlu0 %1458  ;;  %v2030_v63 = vld [vmem:[#allocation3 + $0x38] sm:$0xff] }
 0x229   : > { %1547 = vst.msk [vmem:[#allocation3 + $0x40] sm:$0xff] %vm1538_vm2, %v1459_v62  ;;  %2615 = vmatmul.mubr.msk.f32.gmra.mxu0 %vm2055_vm6, %v2030_v63 }
 0x22a   : > { %1502 = vrot.lane.b32.xlu1 %v1408_v56, %s2816_s10  ;;  %1665 = vrot.lane.b32.xlu0 %v1586_v9, %s2817_s14 }
 0x22b   : > { %v1875_v59 = vpop.permute.xlu1 %1874 }
 0x22c   : > { %1948 = vst.msk [vmem:[#allocation3 + $0xb8] sm:$0xff] %vm1924_vm5, %v1875_v59  ;;  %v1461_v61 = vpop.permute.xlu0 %1460 }
 0x22d   : > { %1548 = vst.msk [vmem:[#allocation3 + $0x48] sm:$0xff] %vm1538_vm2, %v1461_v61 }
 0x22e   : > { %1504 = vrot.lane.b32.xlu1 %v1409_v1, %s2816_s10  ;;  %1856 = vrot.lane.b32.xlu0 %v1778_v0, %s2818_s16  ;;  %s3884_s10 = scalar_lea.vmem [#allocation4], %s2513_s9 }
 0x22f   : > { %v1299_v3 = vpop.permute.xlu1 %1298 }
 0x230   : > { %1370 = vst.msk [vmem:[#allocation3 + $0xc8] sm:$0xff] %vm1344_vm15, %v1299_v3  ;;  %v1652_v5 = vpop.permute.xlu0 %1651 }
 0x231   : > { %1740 = vst.msk [vmem:[#allocation3 + $0x40] sm:$0xff] %vm1731_vm3, %v1652_v5 }
 0x232   : > { %1695 = vrot.lane.b32.xlu1 %v1601_v12, %s2817_s14  ;;  %1858 = vrot.lane.b32.xlu0 %v1779_v4, %s2818_s16 }
 0x233   : > { %v1491_v2 = vpop.permute.xlu1 %1490  ;;  %v2046_v24 = vld [vmem:[#allocation3 + $0xb8] sm:$0xff] }
 0x234   : > { %1563 = vst.msk [vmem:[#allocation3 + $0xc0] sm:$0xff] %vm1538_vm2, %v1491_v2  ;;  %2639 = vmatmul.mubr.msk.f32.gmra.mxu1 %vm2055_vm6, %v2046_v24  ;;  %v1108_v38 = vpop.permute.xlu0 %1107 }
 0x235   : > { %1178 = vst.msk [vmem:[#allocation3 + $0xd0] sm:$0xff] %vm1151_vm11, %v1108_v38 }
 0x236   : > { %1697 = vrot.lane.b32.xlu1 %v1602_v16, %s2817_s14  ;;  %s2557_s14 = sshll.u32 %s2799_s21, 12  ;;  %s2819_s21 = smov [#allocation4]  }
 0x237   : > { %v1493_v58 = vpop.permute.xlu1 %1492  ;;  %s3954_s17 = scalar_lea.hbm %s4013_s5, %s2557_s14  ;;  %s2735_s27 = sshll.u32 %s2819_s21, 4  ;;  %s2736_s27 = int_to_ptr.vmem [resolvable:$false] %s2735_s27 }
 0x238   : > { %1564 = vst.msk [vmem:[#allocation3 + $0xc8] sm:$0xff] %vm1538_vm2, %v1493_v58  ;;  %v1686_v57 = vpop.permute.xlu0 %1685  ;;  %s2737_s29 = scalar_lea.vmem %s2736_s27, 8192 }
 0x239   : > { %1757 = vst.msk [vmem:[#allocation3 + $0xc8] sm:$0xff] %vm1731_vm3, %v1686_v57 }
 0x23a   : > { %1888 = vrot.lane.b32.xlu1 %v1794_v33, %s2818_s16 }
 0x23b   : > { %v1684_v17 = vpop.permute.xlu1 %1683 }
 0x23c   : > { %1756 = vst.msk [vmem:[#allocation3 + $0xc0] sm:$0xff] %vm1731_vm3, %v1684_v17  ;;  %v1877_v49 = vpop.permute.xlu0 %1876 }
 0x23d   : > { %1949 = vst.msk [vmem:[#allocation3 + $0xc0] sm:$0xff] %vm1924_vm5, %v1877_v49 }
 0x23e   : > { %1890 = vrot.lane.b32.xlu1 %v1795_v36, %s2818_s16  ;;  %s2428_s16 = sshll.u32 %s3884_s10, 4  ;;  %s3957_s16 = int_to_ptr.vmem [resolvable:$true] %s2428_s16 }
 0x23f   : > { %v1654_v7 = vpop.permute.xlu1 %1653  ;;  %s2731_s25 = scalar_lea.vmem %s3957_s16, 4096  ;;  %p2738_p1 = scmp.lt.s32.totalorder %s3957_s16, %s2736_s27 }
 0x240   : > { %1741 = vst.msk [vmem:[#allocation3 + $0x48] sm:$0xff] %vm1731_vm3, %v1654_v7  ;;  %v1269_v14 = vpop.permute.xlu0 %1268  ;;  %p2732_p12 = scmp.ne.s32.totalorder %s3957_s16, %s2731_s25  ;;  %p2739_p2 = scmp.lt.s32.totalorder %s2737_s29, %s2731_s25 }
 0x241   : > { %1355 = vst.msk [vmem:[#allocation3 + $0x50] sm:$0xff] %vm1344_vm15, %v1269_v14 }
 0x242   : > { %p2733_p13 = pnand %p2732_p12, %p2891_p4  ;;  %p2740_p3 = por %p2739_p2, %p2738_p1 }
 0x243   : > { %v1845_v45 = vpop.permute.xlu1 %1844 }
 0x244   : > { %1933 = vst.msk [vmem:[#allocation3 + $0x40] sm:$0xff] %vm1924_vm5, %v1845_v45  ;;  %v1847_v28 = vpop.permute.xlu0 %1846  ;;  %v2047_v20 = vld [vmem:[#allocation3 + $0xc0] sm:$0xff]  ;;  %p2734_p0 = pneg %p2733_p13 }
 0x245   : > { %1934 = vst.msk [vmem:[#allocation3 + $0x48] sm:$0xff] %vm1924_vm5, %v1847_v28  ;;  %2641 = vmatprep.mubr.msk.f32.mxu1 %vm2055_vm6, %v2047_v20 }
 0x246   : > { %p2741_p5 = pnand %p2740_p3, %p2734_p0 }
 0x247   : > { %v1110_v11 = vpop.permute.xlu1 %1109 }
 0x248   : > { %1179 = vst.msk [vmem:[#allocation3 + $0xd8] sm:$0xff] %vm1151_vm11, %v1110_v11  ;;  %v1271_v34 = vpop.permute.xlu0 %1270 }
 0x249   : > { %1356 = vst.msk [vmem:[#allocation3 + $0x58] sm:$0xff] %vm1344_vm15, %v1271_v34 }
 0x24b   : > { %v1301_v52 = vpop.permute.xlu1 %1300  ;;  %v2031_v48 = vld [vmem:[#allocation3 + $0x40] sm:$0xff] }
 0x24c   : > { %1371 = vst.msk [vmem:[#allocation3 + $0xd0] sm:$0xff] %vm1344_vm15, %v1301_v52  ;;  %2617 = vmatprep.mubr.msk.f32.mxu0 %vm2055_vm6, %v2031_v48  ;;  %v1463_v53 = vpop.permute.xlu0 %1462  ;;  %v2032_v13 = vld [vmem:[#allocation3 + $0x48] sm:$0xff] }
 0x24d   : > { %1549 = vst.msk [vmem:[#allocation3 + $0x50] sm:$0xff] %vm1538_vm2, %v1463_v53  ;;  %2618 = vmatmul.mubr.msk.f32.gmra.mxu0 %vm2055_vm6, %v2032_v13 }
 0x24f   : > { %v1879_v22 = vpop.permute.xlu1 %1878 }
 0x250   : > { %1950 = vst.msk [vmem:[#allocation3 + $0xc8] sm:$0xff] %vm1924_vm5, %v1879_v22  ;;  %v1465_v21 = vpop.permute.xlu0 %1464 }
 0x251   : > { %1550 = vst.msk [vmem:[#allocation3 + $0x58] sm:$0xff] %vm1538_vm2, %v1465_v21 }
 0x253   : > { %v1303_v35 = vpop.permute.xlu1 %1302 }
 0x254   : > { %1372 = vst.msk [vmem:[#allocation3 + $0xd8] sm:$0xff] %vm1344_vm15, %v1303_v35  ;;  %v1656_v29 = vpop.permute.xlu0 %1655 }
 0x255   : > { %1742 = vst.msk [vmem:[#allocation3 + $0x50] sm:$0xff] %vm1731_vm3, %v1656_v29 }
 0x257   : > { %v1495_v19 = vpop.permute.xlu1 %1494  ;;  %v2048_v6 = vld [vmem:[#allocation3 + $0xc8] sm:$0xff] }
 0x258   : > { %1565 = vst.msk [vmem:[#allocation3 + $0xd0] sm:$0xff] %vm1538_vm2, %v1495_v19  ;;  %2642 = vmatmul.mubr.msk.f32.gmra.mxu1 %vm2055_vm6, %v2048_v6  ;;  %v1112_v37 = vpop.permute.xlu0 %1111 }
 0x259   : > { %1180 = vst.msk [vmem:[#allocation3 + $0xe0] sm:$0xff] %vm1151_vm11, %v1112_v37 }
 0x25b   : > { %v1497_v23 = vpop.permute.xlu1 %1496 }
 0x25c   : > { %1566 = vst.msk [vmem:[#allocation3 + $0xd8] sm:$0xff] %vm1538_vm2, %v1497_v23  ;;  %v1690_v25 = vpop.permute.xlu0 %1689 }
 0x25d   : > { %1759 = vst.msk [vmem:[#allocation3 + $0xd8] sm:$0xff] %vm1731_vm3, %v1690_v25 }
 0x25f   : > { %v1688_v60 = vpop.permute.xlu1 %1687 }
 0x260   : > { %1758 = vst.msk [vmem:[#allocation3 + $0xd0] sm:$0xff] %vm1731_vm3, %v1688_v60  ;;  %v1881_v26 = vpop.permute.xlu0 %1880 }
 0x261   : > { %1951 = vst.msk [vmem:[#allocation3 + $0xd0] sm:$0xff] %vm1924_vm5, %v1881_v26 }
 0x263   : > { %v1658_v27 = vpop.permute.xlu1 %1657 }
 0x264   : > { %1743 = vst.msk [vmem:[#allocation3 + $0x58] sm:$0xff] %vm1731_vm3, %v1658_v27  ;;  %v1273_v30 = vpop.permute.xlu0 %1272 }
 0x265   : > { %1357 = vst.msk [vmem:[#allocation3 + $0x60] sm:$0xff] %vm1344_vm15, %v1273_v30 }
 0x267   : > { %v1849_v31 = vpop.permute.xlu1 %1848 }
 0x268   : > { %1935 = vst.msk [vmem:[#allocation3 + $0x50] sm:$0xff] %vm1924_vm5, %v1849_v31  ;;  %v1851_v32 = vpop.permute.xlu0 %1850  ;;  %v2049_v39 = vld [vmem:[#allocation3 + $0xd0] sm:$0xff] }
 0x269   : > { %1936 = vst.msk [vmem:[#allocation3 + $0x58] sm:$0xff] %vm1924_vm5, %v1851_v32  ;;  %2644 = vmatprep.mubr.msk.f32.mxu1 %vm2055_vm6, %v2049_v39 }
 0x26b   : > { %v1114_v40 = vpop.permute.xlu1 %1113 }
 0x26c   : > { %1181 = vst.msk [vmem:[#allocation3 + $0xe8] sm:$0xff] %vm1151_vm11, %v1114_v40  ;;  %v1275_v41 = vpop.permute.xlu0 %1274 }
 0x26d   : > { %1358 = vst.msk [vmem:[#allocation3 + $0x68] sm:$0xff] %vm1344_vm15, %v1275_v41 }
 0x26f   : > { %v1305_v55 = vpop.permute.xlu1 %1304  ;;  %v2033_v18 = vld [vmem:[#allocation3 + $0x50] sm:$0xff] }
 0x270   : > { %1373 = vst.msk [vmem:[#allocation3 + $0xe0] sm:$0xff] %vm1344_vm15, %v1305_v55  ;;  %2620 = vmatprep.mubr.msk.f32.mxu0 %vm2055_vm6, %v2033_v18  ;;  %v1467_v42 = vpop.permute.xlu0 %1466  ;;  %v2034_v54 = vld [vmem:[#allocation3 + $0x58] sm:$0xff] }
 0x271   : > { %1551 = vst.msk [vmem:[#allocation3 + $0x60] sm:$0xff] %vm1538_vm2, %v1467_v42  ;;  %2621 = vmatmul.mubr.msk.f32.gmra.mxu0 %vm2055_vm6, %v2034_v54 }
 0x273   : > { %v1883_v43 = vpop.permute.xlu1 %1882 }
 0x274   : > { %1952 = vst.msk [vmem:[#allocation3 + $0xd8] sm:$0xff] %vm1924_vm5, %v1883_v43  ;;  %v1469_v44 = vpop.permute.xlu0 %1468 }
 0x275   : > { %1552 = vst.msk [vmem:[#allocation3 + $0x68] sm:$0xff] %vm1538_vm2, %v1469_v44 }
 0x277   : > { %v1307_v46 = vpop.permute.xlu1 %1306 }
 0x278   : > { %1374 = vst.msk [vmem:[#allocation3 + $0xe8] sm:$0xff] %vm1344_vm15, %v1307_v46  ;;  %v1660_v51 = vpop.permute.xlu0 %1659 }
 0x279   : > { %1744 = vst.msk [vmem:[#allocation3 + $0x60] sm:$0xff] %vm1731_vm3, %v1660_v51 }
 0x27b   : > { %v1499_v10 = vpop.permute.xlu1 %1498  ;;  %v2050_v50 = vld [vmem:[#allocation3 + $0xd8] sm:$0xff] }
 0x27c   : > { %1567 = vst.msk [vmem:[#allocation3 + $0xe0] sm:$0xff] %vm1538_vm2, %v1499_v10  ;;  %2645 = vmatmul.mubr.msk.f32.gmra.mxu1 %vm2055_vm6, %v2050_v50  ;;  %v1116_v47 = vpop.permute.xlu0 %1115 }
 0x27d   : > { %1182 = vst.msk [vmem:[#allocation3 + $0xf0] sm:$0xff] %vm1151_vm11, %v1116_v47  ;;  %v2607_v15 = vpop.f32.mrf.mxu0 }
 0x27e   : > { %2382 = vst [vmem:[%s3884_s10 + $0x8] sm:$0xff] %v2607_v15 }
 0x27f   : > { %v1501_v56 = vpop.permute.xlu1 %1500  ;;  %v2222_v8 = vpop.f32.mrf.mxu0 }
 0x280   : > { %1568 = vst.msk [vmem:[#allocation3 + $0xe8] sm:$0xff] %vm1538_vm2, %v1501_v56  ;;  %2381 = vst [vmem:[%s3884_s10] sm:$0xff] %v2222_v8  ;;  %v1694_v62 = vpop.permute.xlu0 %1693 }
 0x281   : > { %1761 = vst.msk [vmem:[#allocation3 + $0xe8] sm:$0xff] %vm1731_vm3, %v1694_v62 }
 0x283   : > { %v1692_v63 = vpop.permute.xlu1 %1691 }
 0x284   : > { %1760 = vst.msk [vmem:[#allocation3 + $0xe0] sm:$0xff] %vm1731_vm3, %v1692_v63  ;;  %v1885_v59 = vpop.permute.xlu0 %1884 }
 0x285   : > { %1953 = vst.msk [vmem:[#allocation3 + $0xe0] sm:$0xff] %vm1924_vm5, %v1885_v59 }
 0x287   : > { %v1662_v1 = vpop.permute.xlu1 %1661 }
 0x288   : > { %1745 = vst.msk [vmem:[#allocation3 + $0x68] sm:$0xff] %vm1731_vm3, %v1662_v1  ;;  %v2631_v9 = vpop.f32.mrf.mxu1  ;;  %v1277_v61 = vpop.permute.xlu0 %1276 }
 0x289   : > { %2398 = vst [vmem:[%s3884_s10 + $0x88] sm:$0xff] %v2631_v9  ;;  %1359 = vst.msk [vmem:[#allocation3 + $0x70] sm:$0xff] %vm1344_vm15, %v1277_v61 }
 0x28a   : > { %v2302_v3 = vpop.f32.mrf.mxu1 }
 0x28b   : > { %2397 = vst [vmem:[%s3884_s10 + $0x80] sm:$0xff] %v2302_v3  ;;  %v1853_v12 = vpop.permute.xlu1 %1852 }
 0x28c   : > { %1937 = vst.msk [vmem:[#allocation3 + $0x60] sm:$0xff] %vm1924_vm5, %v1853_v12  ;;  %v1855_v0 = vpop.permute.xlu0 %1854  ;;  %v2051_v5 = vld [vmem:[#allocation3 + $0xe0] sm:$0xff] }
 0x28d   : > { %1938 = vst.msk [vmem:[#allocation3 + $0x68] sm:$0xff] %vm1924_vm5, %v1855_v0  ;;  %2647 = vmatprep.mubr.msk.f32.mxu1 %vm2055_vm6, %v2051_v5 }
 0x28f   : > { %v1118_v2 = vpop.permute.xlu1 %1117 }
 0x290   : > { %1183 = vst.msk [vmem:[#allocation3 + $0xf8] sm:$0xff] %vm1151_vm11, %v1118_v2  ;;  %v1279_v24 = vpop.permute.xlu0 %1278 }
 0x291   : > { %1360 = vst.msk [vmem:[#allocation3 + $0x78] sm:$0xff] %vm1344_vm15, %v1279_v24 }
 0x293   : > { %v1309_v16 = vpop.permute.xlu1 %1308  ;;  %v2035_v4 = vld [vmem:[#allocation3 + $0x60] sm:$0xff] }
 0x294   : > { %1375 = vst.msk [vmem:[#allocation3 + $0xf0] sm:$0xff] %vm1344_vm15, %v1309_v16  ;;  %2623 = vmatprep.mubr.msk.f32.mxu0 %vm2055_vm6, %v2035_v4  ;;  %v1471_v38 = vpop.permute.xlu0 %1470  ;;  %v2036_v58 = vld [vmem:[#allocation3 + $0x68] sm:$0xff] }
 0x295   : > { %1553 = vst.msk [vmem:[#allocation3 + $0x70] sm:$0xff] %vm1538_vm2, %v1471_v38  ;;  %2624 = vmatmul.mubr.msk.f32.gmra.mxu0 %vm2055_vm6, %v2036_v58 }
 0x297   : > { %v1887_v33 = vpop.permute.xlu1 %1886 }
 0x298   : > { %1954 = vst.msk [vmem:[#allocation3 + $0xe8] sm:$0xff] %vm1924_vm5, %v1887_v33  ;;  %v1473_v57 = vpop.permute.xlu0 %1472 }
 0x299   : > { %1554 = vst.msk [vmem:[#allocation3 + $0x78] sm:$0xff] %vm1538_vm2, %v1473_v57 }
 0x29b   : > { %v1311_v17 = vpop.permute.xlu1 %1310 }
 0x29c   : > { %1376 = vst.msk [vmem:[#allocation3 + $0xf8] sm:$0xff] %vm1344_vm15, %v1311_v17  ;;  %v1664_v36 = vpop.permute.xlu0 %1663 }
 0x29d   : > { %1746 = vst.msk [vmem:[#allocation3 + $0x70] sm:$0xff] %vm1731_vm3, %v1664_v36 }
 0x29f   : > { %v1503_v49 = vpop.permute.xlu1 %1502  ;;  %v2052_v7 = vld [vmem:[#allocation3 + $0xe8] sm:$0xff] }
 0x2a0   : > { %1569 = vst.msk [vmem:[#allocation3 + $0xf0] sm:$0xff] %vm1538_vm2, %v1503_v49  ;;  %2648 = vmatmul.mubr.msk.f32.gmra.mxu1 %vm2055_vm6, %v2052_v7  ;;  %v1666_v14 = vpop.permute.xlu0 %1665 }
 0x2a1   : > { %1747 = vst.msk [vmem:[#allocation3 + $0x78] sm:$0xff] %vm1731_vm3, %v1666_v14  ;;  %v2610_v45 = vpop.f32.mrf.mxu0 }
 0x2a2   : > { %2384 = vst [vmem:[%s3884_s10 + $0x18] sm:$0xff] %v2610_v45 }
 0x2a3   : > { %v1505_v28 = vpop.permute.xlu1 %1504  ;;  %v2232_v20 = vpop.f32.mrf.mxu0 }
 0x2a4   : > { %1570 = vst.msk [vmem:[#allocation3 + $0xf8] sm:$0xff] %vm1538_vm2, %v1505_v28  ;;  %2383 = vst [vmem:[%s3884_s10 + $0x10] sm:$0xff] %v2232_v20  ;;  %v1857_v11 = vpop.permute.xlu0 %1856 }
 0x2a5   : > { %1939 = vst.msk [vmem:[#allocation3 + $0x70] sm:$0xff] %vm1924_vm5, %v1857_v11 }
 0x2a7   : > { %v1696_v34 = vpop.permute.xlu1 %1695 }
 0x2a8   : > { %1762 = vst.msk [vmem:[#allocation3 + $0xf0] sm:$0xff] %vm1731_vm3, %v1696_v34  ;;  %v1859_v52 = vpop.permute.xlu0 %1858 }
 0x2a9   : > { %1940 = vst.msk [vmem:[#allocation3 + $0x78] sm:$0xff] %vm1924_vm5, %v1859_v52 }
 0x2ab   : > { %v1698_v48 = vpop.permute.xlu1 %1697 }
 0x2ac   : > { %1763 = vst.msk [vmem:[#allocation3 + $0xf8] sm:$0xff] %vm1731_vm3, %v1698_v48  ;;  %v2634_v53 = vpop.f32.mrf.mxu1  ;;  %v2037_v13 = vld [vmem:[#allocation3 + $0x70] sm:$0xff] }
 0x2ad   : > { %2400 = vst [vmem:[%s3884_s10 + $0x98] sm:$0xff] %v2634_v53  ;;  %2626 = vmatprep.mubr.msk.f32.mxu0 %vm2055_vm6, %v2037_v13 }
 0x2ae   : > { %v2312_v22 = vpop.f32.mrf.mxu1 }
 0x2af   : > { %2399 = vst [vmem:[%s3884_s10 + $0x90] sm:$0xff] %v2312_v22  ;;  %v1889_v21 = vpop.permute.xlu1 %1888 }
 0x2b0   : > { %1955 = vst.msk [vmem:[#allocation3 + $0xf0] sm:$0xff] %vm1924_vm5, %v1889_v21  ;;  %v2038_v35 = vld [vmem:[#allocation3 + $0x78] sm:$0xff] }
 0x2b1   : > { %2627 = vmatmul.mubr.msk.f32.gmra.mxu0 %vm2055_vm6, %v2038_v35 }
 0x2b3   : > { %v1891_v29 = vpop.permute.xlu1 %1890 }
 0x2b4   : > { %1956 = vst.msk [vmem:[#allocation3 + $0xf8] sm:$0xff] %vm1924_vm5, %v1891_v29 }
 0x2b7   : > { %v2053_v19 = vld [vmem:[#allocation3 + $0xf0] sm:$0xff] }
 0x2b8   : > { %2650 = vmatprep.mubr.msk.f32.mxu1 %vm2055_vm6, %v2053_v19 }
 0x2bb   : > { %v2054_v6 = vld [vmem:[#allocation3 + $0xf8] sm:$0xff] }
 0x2bc   : > { %2651 = vmatmul.mubr.msk.f32.gmra.mxu1 %vm2055_vm6, %v2054_v6 }
 0x2c5   : > { %v2613_v37 = vpop.f32.mrf.mxu0 }
 0x2c6   : > { %2386 = vst [vmem:[%s3884_s10 + $0x28] sm:$0xff] %v2613_v37 }
 0x2c7   : > { %v2242_v23 = vpop.f32.mrf.mxu0 }
 0x2c8   : > { %2385 = vst [vmem:[%s3884_s10 + $0x20] sm:$0xff] %v2242_v23 }
 0x2d0   : > { %v2637_v25 = vpop.f32.mrf.mxu1 }
 0x2d1   : > { %2402 = vst [vmem:[%s3884_s10 + $0xa8] sm:$0xff] %v2637_v25 }
 0x2d2   : > { %v2322_v60 = vpop.f32.mrf.mxu1 }
 0x2d3   : > { %2401 = vst [vmem:[%s3884_s10 + $0xa0] sm:$0xff] %v2322_v60 }
 0x2e9   : > { %v2616_v26 = vpop.f32.mrf.mxu0 }
 0x2ea   : > { %2388 = vst [vmem:[%s3884_s10 + $0x38] sm:$0xff] %v2616_v26 }
 0x2eb   : > { %v2252_v27 = vpop.f32.mrf.mxu0 }
 0x2ec   : > { %2387 = vst [vmem:[%s3884_s10 + $0x30] sm:$0xff] %v2252_v27 }
 0x2f4   : > { %v2640_v30 = vpop.f32.mrf.mxu1 }
 0x2f5   : > { %2404 = vst [vmem:[%s3884_s10 + $0xb8] sm:$0xff] %v2640_v30 }
 0x2f6   : > { %v2332_v31 = vpop.f32.mrf.mxu1 }
 0x2f7   : > { %2403 = vst [vmem:[%s3884_s10 + $0xb0] sm:$0xff] %v2332_v31 }
 0x30d   : > { %v2619_v32 = vpop.f32.mrf.mxu0 }
 0x30e   : > { %2390 = vst [vmem:[%s3884_s10 + $0x48] sm:$0xff] %v2619_v32 }
 0x30f   : > { %v2262_v39 = vpop.f32.mrf.mxu0 }
 0x310   : > { %2389 = vst [vmem:[%s3884_s10 + $0x40] sm:$0xff] %v2262_v39 }
 0x318   : > { %v2643_v40 = vpop.f32.mrf.mxu1 }
 0x319   : > { %2406 = vst [vmem:[%s3884_s10 + $0xc8] sm:$0xff] %v2643_v40 }
 0x31a   : > { %v2342_v41 = vpop.f32.mrf.mxu1 }
 0x31b   : > { %2405 = vst [vmem:[%s3884_s10 + $0xc0] sm:$0xff] %v2342_v41 }
 0x331   : > { %v2622_v55 = vpop.f32.mrf.mxu0 }
 0x332   : > { %2392 = vst [vmem:[%s3884_s10 + $0x58] sm:$0xff] %v2622_v55 }
 0x333   : > { %v2272_v18 = vpop.f32.mrf.mxu0 }
 0x334   : > { %2391 = vst [vmem:[%s3884_s10 + $0x50] sm:$0xff] %v2272_v18 }
 0x33c   : > { %v2646_v42 = vpop.f32.mrf.mxu1 }
 0x33d   : > { %2408 = vst [vmem:[%s3884_s10 + $0xd8] sm:$0xff] %v2646_v42 }
 0x33e   : > { %v2352_v54 = vpop.f32.mrf.mxu1 }
 0x33f   : > { %2407 = vst [vmem:[%s3884_s10 + $0xd0] sm:$0xff] %v2352_v54 }
 0x355   : > { %v2625_v43 = vpop.f32.mrf.mxu0 }
 0x356   : > { %2394 = vst [vmem:[%s3884_s10 + $0x68] sm:$0xff] %v2625_v43 }
 0x357   : > { %v2282_v44 = vpop.f32.mrf.mxu0 }
 0x358   : > { %2393 = vst [vmem:[%s3884_s10 + $0x60] sm:$0xff] %v2282_v44 }
 0x360   : > { %v2649_v46 = vpop.f32.mrf.mxu1 }
 0x361   : > { %2410 = vst [vmem:[%s3884_s10 + $0xe8] sm:$0xff] %v2649_v46 }
 0x362   : > { %v2362_v51 = vpop.f32.mrf.mxu1 }
 0x363   : > { %2409 = vst [vmem:[%s3884_s10 + $0xe0] sm:$0xff] %v2362_v51 }
 0x371   : > { %v2628_v10 = vpop.f32.mrf.mxu0 }
 0x372   : > { %2396 = vst [vmem:[%s3884_s10 + $0x78] sm:$0xff] %v2628_v10 }
 0x373   : > { %v2292_v50 = vpop.f32.mrf.mxu0 }
 0x374   : > { %2395 = vst [vmem:[%s3884_s10 + $0x70] sm:$0xff] %v2292_v50 }
 0x37c   : > { %v2652_v47 = vpop.f32.mrf.mxu1 }
 0x37d   : > { %2412 = vst [vmem:[%s3884_s10 + $0xf8] sm:$0xff] %v2652_v47 }
 0x37e   : > { %v2372_v15 = vpop.f32.mrf.mxu1 }
 0x37f   : > { %2411 = vst [vmem:[%s3884_s10 + $0xf0] sm:$0xff] %v2372_v15 }
 0x380   : > { %2744 = shalt.err (!%p2741_p5)
}
 0x381   : > { %s2745_s7 = scalar_lea.hbm %s3954_s17, 4096  ;;  %s2749_s9 = scalar_lea.hbm %s4013_s5, 8192 }
 0x382   : > { %p2746_p6 = scmp.ne.s32.totalorder %s3954_s17, %s2745_s7  ;;  %p2750_p10 = scmp.lt.s32.totalorder %s3954_s17, %s4013_s5 }
 0x383   : > { %p2751_p11 = scmp.lt.s32.totalorder %s2749_s9, %s2745_s7 }
 0x384   : > { %p2747_p7 = pnand %p2746_p6, %p2891_p4 }
 0x385   : > { %p2752_p12 = por %p2751_p11, %p2750_p10 }
 0x386   : > { %p2748_p9 = pneg %p2747_p7 }
 0x388   : > { %p2753_p13 = pnand %p2752_p12, %p2748_p9 }
 0x38a   : > { %2756 = shalt.err (!%p2753_p13)
}
 0x38b   : > { %s2820_s11 = smov 128  }
 0x38c   : > { %2663 = dma.vmem_to_hbm [thread:$0]  (%p2891_p4), %s3957_s16, 4096, %s3954_s17, %s3962_s24, %s2820_s11, %s2820_s11, %s2811_s13  }
 0x38d PF: > { %p2669_p0 = scmp.ge.s32.totalorder %s2807_s23, 2  ;;  %s2443_s12 = sand.u32 1, %s2787_s18  }
 0x38e   : > { %s2444_s25 = scalar_lea.sflag [#allocation5], %s2443_s12 }
 0x38f   : > { %p2666_p1 = pnand %p2669_p0, %p2898_p8 }
 0x391   : > { %p2667_p2 = pneg %p2666_p1 }
 0x393   : > { %2782 = dma.done.wait (%p2667_p2), %s2444_s25, 4096  }
 0x394   : > { %2784 = vsyncadd (%p2667_p2), %s2444_s25, 4294963200  ;;  %s18_s23 = sadd.s32 1, %s2807_s23   ;;  %s4046_s18 = smov %s2791_s19 }
 0x395   : > { %p15_p3 = scmp.ge.s32.totalorder %s18_s23, 4   ;;  %s4047_s19 = smov %s2795_s20 }
 0x396   : > { %s4048_s20 = smov %s2904_s6  ;;  %s4049_s21 = smov %s2803_s22 }
 0x397   : > { %s4050_s22 = smov %s4052_s26  ;;  %17 = sbr.rel (!%p15_p3) target bundleno = 4 (0x4), region = 85 }
 0x39c   :  { %2449 = vsyncpa [#allocation5], 1 }
 0x39d   :  { %2451 = vsyncpa [#allocation5 + $0x1], 1 }

</bundles_post_ra>
